<compile_context>
chip_gen: v7x
topology: tpu7x:2x2x1
jax: 0.10.0
libtpu: 0.0.40
codegen_flags: <defaults>
</compile_context>

<pallas_src>
import jax
import jax.numpy as jnp
from jax.experimental import pallas as pl
from jax.experimental.pallas import tpu as pltpu

# ---- module hyperparameters (RNNEncoder defaults) ---------------------------
ACTION_DIM = 2
STATE_DIM = 2
REWARD_DIM = 1
ACTION_EMBED = 10
STATE_EMBED = 10
REWARD_EMBED = 5
HIDDEN = 64
LATENT = 32
IN_DIM = ACTION_DIM + STATE_DIM + REWARD_DIM            # 5
FEAT_DIM = ACTION_EMBED + STATE_EMBED + REWARD_EMBED    # 25
# layers_before_gru = (), layers_after_gru = ()  (defaults -> no extra FC layers)

# ---- padded in-kernel layout constants ---------------------------------------
GP = 128                 # per-gate lane padding (vreg lane width)
LW = 3 * GP              # 384: [r | z | n], each in its own 128-lane block
IN_PAD = 8               # x padded from 5 -> 8 columns
FEAT_PAD = 32            # features padded from 25 -> 32 columns
HEAD_W = 2 * GP          # 256: wmu at lanes 0:32, wlv at lanes 128:160
OUT_W = 128              # output slab: [mu(0:32) | logvar(32:64) | sample(64:96) | pad]

# weight-blob row offsets (all sublane-tile aligned where it matters)
ROW_WHH = 0              # (64, 384)  recurrent gate weights
ROW_WIH = 64             # (32, 384)  input gate weights (25 real rows)
ROW_BGI = 96             # (1, 384)   input-gate biases (r/z hidden biases folded in)
ROW_BHHN = 97            # (1, 64)    hidden bias of n gate (kept inside r*(...))
ROW_BFEAT = 98           # (1, 32)    feature-extractor biases
ROW_BHEAD = 99           # (1, 256)   fc_mu / fc_logvar biases
ROW_WFEAT = 104          # (8, 32)    block-diagonal feature-extractor weight
ROW_WHEAD = 112          # (64, 256)  fc_mu / fc_logvar weights
BLOB_ROWS = 176


def _make_kernel(T, B):
    H = HIDDEN
    TB = T * B

    def kernel(x_ref, h0_ref, eps_ref, w_ref, slab_ref, hout_ref, gi_ref):
        # --- static, tile-aligned views into the packed weight blob ---
        w_feat = w_ref[ROW_WFEAT:ROW_WFEAT + IN_PAD, 0:FEAT_PAD]
        b_feat = w_ref[ROW_BFEAT:ROW_BFEAT + 1, 0:FEAT_PAD]
        wih = w_ref[ROW_WIH:ROW_WIH + FEAT_PAD, :]
        bgi = w_ref[ROW_BGI:ROW_BGI + 1, :]
        whh = w_ref[ROW_WHH:ROW_WHH + H, :]
        bhh_n = jnp.broadcast_to(w_ref[ROW_BHHN:ROW_BHHN + 1, 0:H], (B, H))  # hoisted
        whead = w_ref[ROW_WHEAD:ROW_WHEAD + H, 0:HEAD_W]
        bhead = w_ref[ROW_BHEAD:ROW_BHEAD + 1, 0:HEAD_W]

        # --- batched (T*B) non-recurrent precompute: features + input-side gates ---
        feat = jnp.maximum(
            jnp.dot(x_ref[...], w_feat, preferred_element_type=jnp.float32) + b_feat,
            0.0)                                                         # (T*B, 32)
        gi_ref[...] = (jnp.dot(feat, wih, preferred_element_type=jnp.float32)
                       + bgi)                                            # (T*B, 384)

        # --- serial GRU recurrence: ONE fused (B,64)@(64,384) matmul per step ---
        def step(t, h):
            row = pl.multiple_of(t * B, B)
            gh = jnp.dot(h, whh, preferred_element_type=jnp.float32)    # (B, 384)
            gi = gi_ref[pl.ds(row, B), :]                               # (B, 384)
            r = jax.nn.sigmoid(gi[:, 0:H] + gh[:, 0:H])
            z = jax.nn.sigmoid(gi[:, GP:GP + H] + gh[:, GP:GP + H])
            n = jnp.tanh(gi[:, 2 * GP:2 * GP + H]
                         + r * (gh[:, 2 * GP:2 * GP + H] + bhh_n))
            h_new = (1.0 - z) * n + z * h                               # stays (B, 64)
            hout_ref[pl.ds(row, B), :] = h_new
            return h_new

        jax.lax.fori_loop(0, T, step, h0_ref[...], unroll=min(T, 8))

        # --- batched heads + reparameterisation over the stacked hidden states ---
        h_all = hout_ref[...]                                            # (T*B, 64)
        heads = (jnp.dot(h_all, whead, preferred_element_type=jnp.float32)
                 + bhead)                                                # (T*B, 256)
        mu = heads[:, 0:LATENT]
        lv = heads[:, GP:GP + LATENT]
        sample = mu + eps_ref[...] * jnp.exp(0.5 * lv)
        slab_ref[...] = jnp.concatenate(
            [mu, lv, sample, jnp.zeros((TB, OUT_W - 3 * LATENT), jnp.float32)],
            axis=-1)                                                     # (T*B, 128)

    return kernel


# ---- wrapper -----------------------------------------------------------------
def rnn_encoder_forward(actions, states, rewards, hidden_state, eps, p):
    """forward(actions, states, rewards, hidden_state, return_prior=False, sample=True).

    actions/states/rewards: (T, B, dim); hidden_state: (1, B, HIDDEN);
    eps: (T, B, LATENT) standard-normal noise for reparameterisation.
    Returns (latent_sample, latent_mean, latent_logvar, gru_output).
    """
    # TODO(synk): utl.squash_action is identity unless args.norm_actions_post_sampling
    #             is set (then tanh); assumed identity here.
    # TODO(synk): return_prior=True / detach_every are host-side glue (prior is the
    #             heads over a zero hidden state; detach only affects gradients).
    T, B, _ = actions.shape
    H = HIDDEN
    TB = T * B

    # --- host-side layout (free XLA plumbing; no model compute moved out) ---
    x_cat = jnp.concatenate([actions, states, rewards], axis=-1).reshape(TB, IN_DIM)
    x_pad = jnp.zeros((TB, IN_PAD), jnp.float32).at[:, :IN_DIM].set(x_cat)
    h0 = hidden_state.reshape(B, H).astype(jnp.float32)
    eps2 = eps.reshape(TB, LATENT).astype(jnp.float32)

    # --- one packed, lane-padded weight blob (single prologue DMA) ---
    wih = jnp.concatenate([p["wih_a"], p["wih_s"], p["wih_r"]], axis=0)   # (25, 192)
    bih, bhh, whh = p["bih"], p["bhh"], p["whh"]

    blob = jnp.zeros((BLOB_ROWS, LW), jnp.float32)
    # recurrent weights, each gate [r, z, n] padded to its own 128-lane block
    blob = blob.at[ROW_WHH:ROW_WHH + H, 0:H].set(whh[:, 0:H])
    blob = blob.at[ROW_WHH:ROW_WHH + H, GP:GP + H].set(whh[:, H:2 * H])
    blob = blob.at[ROW_WHH:ROW_WHH + H, 2 * GP:2 * GP + H].set(whh[:, 2 * H:])
    # input-gate weights (same lane layout)
    blob = blob.at[ROW_WIH:ROW_WIH + FEAT_DIM, 0:H].set(wih[:, 0:H])
    blob = blob.at[ROW_WIH:ROW_WIH + FEAT_DIM, GP:GP + H].set(wih[:, H:2 * H])
    blob = blob.at[ROW_WIH:ROW_WIH + FEAT_DIM, 2 * GP:2 * GP + H].set(wih[:, 2 * H:])
    # input-gate biases: r/z hidden biases folded in, n hidden bias kept apart
    blob = blob.at[ROW_BGI, 0:H].set(bih[0, 0:H] + bhh[0, 0:H])
    blob = blob.at[ROW_BGI, GP:GP + H].set(bih[0, H:2 * H] + bhh[0, H:2 * H])
    blob = blob.at[ROW_BGI, 2 * GP:2 * GP + H].set(bih[0, 2 * H:])
    blob = blob.at[ROW_BHHN, 0:H].set(bhh[0, 2 * H:])
    # block-diagonal feature extractor: one matmul covers action/state/reward encoders
    blob = blob.at[ROW_WFEAT:ROW_WFEAT + ACTION_DIM, 0:ACTION_EMBED].set(p["wa"])
    blob = blob.at[ROW_WFEAT + ACTION_DIM:ROW_WFEAT + ACTION_DIM + STATE_DIM,
                   ACTION_EMBED:ACTION_EMBED + STATE_EMBED].set(p["ws"])
    blob = blob.at[ROW_WFEAT + ACTION_DIM + STATE_DIM:ROW_WFEAT + IN_DIM,
                   ACTION_EMBED + STATE_EMBED:FEAT_DIM].set(p["wr"])
    blob = blob.at[ROW_BFEAT, 0:ACTION_EMBED].set(p["ba"][0])
    blob = blob.at[ROW_BFEAT, ACTION_EMBED:ACTION_EMBED + STATE_EMBED].set(p["bs"][0])
    blob = blob.at[ROW_BFEAT, ACTION_EMBED + STATE_EMBED:FEAT_DIM].set(p["br"][0])
    # heads: mu at lanes 0:32, logvar at lanes 128:160 (both vreg-offset aligned)
    blob = blob.at[ROW_WHEAD:ROW_WHEAD + H, 0:LATENT].set(p["wmu"])
    blob = blob.at[ROW_WHEAD:ROW_WHEAD + H, GP:GP + LATENT].set(p["wlv"])
    blob = blob.at[ROW_BHEAD, 0:LATENT].set(p["bmu"][0])
    blob = blob.at[ROW_BHEAD, GP:GP + LATENT].set(p["blv"][0])

    # Single kernel invocation, every operand resident in VMEM (< 1 MiB total here).
    # TODO(synk): for very large T*B (>~16-32K rows), chunk T with an "arbitrary"
    #             grid axis carrying h and set vmem_limit_bytes (v7x has 64 MiB VMEM).
    slab, hout = pl.pallas_call(
        _make_kernel(T, B),
        out_shape=(
            jax.ShapeDtypeStruct((TB, OUT_W), jnp.float32),   # [mu|logvar|sample|pad]
            jax.ShapeDtypeStruct((TB, H), jnp.float32),       # GRU hidden history
        ),
        scratch_shapes=[pltpu.VMEM((TB, LW), jnp.float32)],   # precomputed input gates
    )(x_pad, h0, eps2, blob)

    mean = slab[:, 0:LATENT].reshape(T, B, LATENT)
    logvar = slab[:, LATENT:2 * LATENT].reshape(T, B, LATENT)
    sample = slab[:, 2 * LATENT:3 * LATENT].reshape(T, B, LATENT)
    output = hout.reshape(T, B, H)

    # mimic the "if latent_mean.shape[0] == 1: squeeze" branch of forward()
    if T == 1:
        sample, mean, logvar = sample[0], mean[0], logvar[0]
    return sample, mean, logvar, output


# ---- pure-JAX reference (for correctness check) ------------------------------
def reference_forward(actions, states, rewards, h0, eps, p):
    relu = lambda x: jnp.maximum(x, 0.0)
    ha = relu(actions @ p["wa"] + p["ba"])
    hs = relu(states @ p["ws"] + p["bs"])
    hr = relu(rewards @ p["wr"] + p["br"])
    x = jnp.concatenate([ha, hs, hr], axis=-1)
    wih = jnp.concatenate([p["wih_a"], p["wih_s"], p["wih_r"]], axis=0)
    H = HIDDEN

    def step(h, xt):
        gi = xt @ wih + p["bih"]
        gh = h @ p["whh"] + p["bhh"]
        r = jax.nn.sigmoid(gi[:, :H] + gh[:, :H])
        z = jax.nn.sigmoid(gi[:, H:2 * H] + gh[:, H:2 * H])
        n = jnp.tanh(gi[:, 2 * H:] + r * gh[:, 2 * H:])
        h_new = (1.0 - z) * n + z * h
        return h_new, h_new

    _, out = jax.lax.scan(step, h0[0], x)
    mu = out @ p["wmu"] + p["bmu"]
    lv = out @ p["wlv"] + p["blv"]
    sample = mu + eps * jnp.exp(0.5 * lv)
    return sample, mu, lv, out


# ---- deterministic parameter init -------------------------------------------
def init_params(key):
    ks = jax.random.split(key, 16)

    def w(k, shape, scale=0.3):
        return (scale * jax.random.normal(k, shape)).astype(jnp.float32)

    in_feat = ACTION_EMBED + STATE_EMBED + REWARD_EMBED
    wih = w(ks[6], (in_feat, 3 * HIDDEN), 0.15)   # transposed PyTorch weight_ih_l0
    return {
        "wa": w(ks[0], (ACTION_DIM, ACTION_EMBED)), "ba": w(ks[1], (1, ACTION_EMBED), 0.1),
        "ws": w(ks[2], (STATE_DIM, STATE_EMBED)),   "bs": w(ks[3], (1, STATE_EMBED), 0.1),
        "wr": w(ks[4], (REWARD_DIM, REWARD_EMBED)), "br": w(ks[5], (1, REWARD_EMBED), 0.1),
        # GRU weight split along the concat(ha,hs,hr) axis; small nonzero biases to
        # exercise the full gate math (module init is 0, forward supports any value).
        "wih_a": wih[:ACTION_EMBED],
        "wih_s": wih[ACTION_EMBED:ACTION_EMBED + STATE_EMBED],
        "wih_r": wih[ACTION_EMBED + STATE_EMBED:],
        "bih": w(ks[12], (1, 3 * HIDDEN), 0.05),
        "whh": w(ks[7], (HIDDEN, 3 * HIDDEN), 0.1),
        "bhh": w(ks[13], (1, 3 * HIDDEN), 0.05),
        "wmu": w(ks[8], (HIDDEN, LATENT), 0.2), "bmu": w(ks[9], (1, LATENT), 0.1),
        "wlv": w(ks[10], (HIDDEN, LATENT), 0.2), "blv": w(ks[11], (1, LATENT), 0.1),
    }


if __name__ == "__main__":
    key = jax.random.PRNGKey(0)
    k_par, k_act, k_st, k_rew, k_h0, k_eps = jax.random.split(key, 6)

    T, B = 8, 8
    params = init_params(k_par)
    actions = jax.random.normal(k_act, (T, B, ACTION_DIM), jnp.float32)
    states = jax.random.normal(k_st, (T, B, STATE_DIM), jnp.float32)
    rewards = jax.random.normal(k_rew, (T, B, REWARD_DIM), jnp.float32)
    hidden_state = 0.1 * jax.random.normal(k_h0, (1, B, HIDDEN), jnp.float32)
    # TODO(synk): the module draws eps with torch.randn_like inside forward; here the
    #             reparameterisation noise is supplied from the host.
    eps = jax.random.normal(k_eps, (T, B, LATENT), jnp.float32)

    outs = rnn_encoder_forward(actions, states, rewards, hidden_state, eps, params)
    outs = jax.block_until_ready(outs)

    refs = reference_forward(actions, states, rewards, hidden_state, eps, params)
    for o, r in zip(outs, refs):
        assert o.shape == r.shape
        assert jnp.allclose(o, r, rtol=1e-4, atol=1e-5), float(jnp.max(jnp.abs(o - r)))

    print("KERNEL_OK")
</pallas_src>

<mosaic_0001>
module attributes {stable_mosaic.version = 11 : i64} {
  func.func @kernel(%arg0: memref<64x8xf32, #tpu.memory_space<vmem>>, %arg1: memref<8x64xf32, #tpu.memory_space<vmem>>, %arg2: memref<64x32xf32, #tpu.memory_space<vmem>>, %arg3: memref<176x384xf32, #tpu.memory_space<vmem>>, %arg4: memref<64x128xf32, #tpu.memory_space<vmem>>, %arg5: memref<64x64xf32, #tpu.memory_space<vmem>>, %arg6: memref<64x384xf32, #tpu.memory_space<vmem>>) attributes {dimension_semantics = [], scalar_prefetch = 0 : i64, scratch_operands = 1 : i64, tpu.core_type = #tpu.core_type<tc>} {
    %c104 = arith.constant 104 : index
    %c0 = arith.constant 0 : index
    %0 = vector.load %arg3[%c104, %c0] : memref<176x384xf32, #tpu.memory_space<vmem>>, vector<8x32xf32>
    %c98 = arith.constant 98 : index
    %c0_0 = arith.constant 0 : index
    %1 = vector.load %arg3[%c98, %c0_0] : memref<176x384xf32, #tpu.memory_space<vmem>>, vector<1x32xf32>
    %c64 = arith.constant 64 : index
    %c0_1 = arith.constant 0 : index
    %2 = vector.load %arg3[%c64, %c0_1] : memref<176x384xf32, #tpu.memory_space<vmem>>, vector<32x384xf32>
    %c96 = arith.constant 96 : index
    %c0_2 = arith.constant 0 : index
    %3 = vector.load %arg3[%c96, %c0_2] : memref<176x384xf32, #tpu.memory_space<vmem>>, vector<1x384xf32>
    %c0_3 = arith.constant 0 : index
    %c0_4 = arith.constant 0 : index
    %4 = vector.load %arg3[%c0_3, %c0_4] : memref<176x384xf32, #tpu.memory_space<vmem>>, vector<64x384xf32>
    %c97 = arith.constant 97 : index
    %c0_5 = arith.constant 0 : index
    %5 = vector.load %arg3[%c97, %c0_5] : memref<176x384xf32, #tpu.memory_space<vmem>>, vector<1x64xf32>
    %6 = vector.shape_cast %5 : vector<1x64xf32> to vector<1x64xf32>
    %7 = vector.broadcast %6 : vector<1x64xf32> to vector<8x64xf32>
    %c112 = arith.constant 112 : index
    %c0_6 = arith.constant 0 : index
    %8 = vector.load %arg3[%c112, %c0_6] : memref<176x384xf32, #tpu.memory_space<vmem>>, vector<64x256xf32>
    %c99 = arith.constant 99 : index
    %c0_7 = arith.constant 0 : index
    %9 = vector.load %arg3[%c99, %c0_7] : memref<176x384xf32, #tpu.memory_space<vmem>>, vector<1x256xf32>
    %c0_8 = arith.constant 0 : index
    %c0_9 = arith.constant 0 : index
    %10 = vector.load %arg0[%c0_8, %c0_9] : memref<64x8xf32, #tpu.memory_space<vmem>>, vector<64x8xf32>
    %cst = arith.constant dense<0.000000e+00> : vector<64x32xf32>
    %11 = tpu.matmul %10, %0, %cst {dimension_numbers = #tpu.dot_dimension_numbers<[1], [0], [0], [1], [0, 0, 1, 1], [], []>} : vector<64x8xf32>, vector<8x32xf32>, vector<64x32xf32> -> vector<64x32xf32>
    %12 = vector.broadcast %1 : vector<1x32xf32> to vector<64x32xf32>
    %13 = arith.addf %11, %12 : vector<64x32xf32>
    %cst_10 = arith.constant 0.000000e+00 : f32
    %14 = vector.broadcast %cst_10 : f32 to vector<64x32xf32>
    %15 = arith.maximumf %13, %14 : vector<64x32xf32>
    %cst_11 = arith.constant dense<0.000000e+00> : vector<64x384xf32>
    %16 = tpu.matmul %15, %2, %cst_11 {dimension_numbers = #tpu.dot_dimension_numbers<[1], [0], [0], [1], [0, 0, 1, 1], [], []>} : vector<64x32xf32>, vector<32x384xf32>, vector<64x384xf32> -> vector<64x384xf32>
    %17 = vector.broadcast %3 : vector<1x384xf32> to vector<64x384xf32>
    %18 = arith.addf %16, %17 : vector<64x384xf32>
    %c0_12 = arith.constant 0 : index
    %c0_13 = arith.constant 0 : index
    %19 = vector.load %arg6[%c0_12, %c0_13] : memref<64x384xf32, #tpu.memory_space<vmem>>, vector<64x384xf32>
    tpu.vector_store %arg6[%c0_12, %c0_13], %18 {strides = array<i32>} : memref<64x384xf32, #tpu.memory_space<vmem>>, vector<64x384xf32>,
    %c0_14 = arith.constant 0 : index
    %c0_15 = arith.constant 0 : index
    %20 = vector.load %arg1[%c0_14, %c0_15] : memref<8x64xf32, #tpu.memory_space<vmem>>, vector<8x64xf32>
    %c0_i32 = arith.constant 0 : i32
    %c8_i32 = arith.constant 8 : i32
    %21 = arith.muli %c0_i32, %c8_i32 : i32
    %22 = tpu.assume_multiple %21, 8 : i32
    %cst_16 = arith.constant dense<0.000000e+00> : vector<8x384xf32>
    %23 = tpu.matmul %20, %4, %cst_16 {dimension_numbers = #tpu.dot_dimension_numbers<[1], [0], [0], [1], [0, 0, 1, 1], [], []>} : vector<8x64xf32>, vector<64x384xf32>, vector<8x384xf32> -> vector<8x384xf32>
    %24 = arith.index_cast %22 : i32 to index
    %c0_17 = arith.constant 0 : index
    %25 = vector.load %arg6[%24, %c0_17] : memref<64x384xf32, #tpu.memory_space<vmem>>, vector<8x384xf32>
    %26 = vector.extract_strided_slice %25 {offsets = [0, 0], sizes = [8, 64], strides = [1, 1]} : vector<8x384xf32> to vector<8x64xf32>
    %27 = vector.extract_strided_slice %23 {offsets = [0, 0], sizes = [8, 64], strides = [1, 1]} : vector<8x384xf32> to vector<8x64xf32>
    %28 = arith.addf %26, %27 : vector<8x64xf32>
    %29 = arith.negf %28 : vector<8x64xf32>
    %30 = math.exp %29 : vector<8x64xf32>
    %cst_18 = arith.constant 1.000000e+00 : f32
    %31 = vector.broadcast %cst_18 : f32 to vector<8x64xf32>
    %32 = arith.addf %31, %30 : vector<8x64xf32>
    %33 = arith.divf %31, %32 : vector<8x64xf32>
    %34 = vector.extract_strided_slice %25 {offsets = [0, 128], sizes = [8, 64], strides = [1, 1]} : vector<8x384xf32> to vector<8x64xf32>
    %35 = vector.extract_strided_slice %23 {offsets = [0, 128], sizes = [8, 64], strides = [1, 1]} : vector<8x384xf32> to vector<8x64xf32>
    %36 = arith.addf %34, %35 : vector<8x64xf32>
    %37 = arith.negf %36 : vector<8x64xf32>
    %38 = math.exp %37 : vector<8x64xf32>
    %cst_19 = arith.constant 1.000000e+00 : f32
    %39 = vector.broadcast %cst_19 : f32 to vector<8x64xf32>
    %40 = arith.addf %39, %38 : vector<8x64xf32>
    %41 = arith.divf %39, %40 : vector<8x64xf32>
    %42 = vector.extract_strided_slice %25 {offsets = [0, 256], sizes = [8, 64], strides = [1, 1]} : vector<8x384xf32> to vector<8x64xf32>
    %43 = vector.extract_strided_slice %23 {offsets = [0, 256], sizes = [8, 64], strides = [1, 1]} : vector<8x384xf32> to vector<8x64xf32>
    %44 = arith.addf %43, %7 : vector<8x64xf32>
    %45 = arith.mulf %33, %44 : vector<8x64xf32>
    %46 = arith.addf %42, %45 : vector<8x64xf32>
    %47 = math.tanh %46 : vector<8x64xf32>
    %cst_20 = arith.constant 1.000000e+00 : f32
    %48 = vector.broadcast %cst_20 : f32 to vector<8x64xf32>
    %49 = arith.subf %48, %41 : vector<8x64xf32>
    %50 = arith.mulf %49, %47 : vector<8x64xf32>
    %51 = arith.mulf %41, %20 : vector<8x64xf32>
    %52 = arith.addf %50, %51 : vector<8x64xf32>
    %53 = arith.index_cast %22 : i32 to index
    %c0_21 = arith.constant 0 : index
    %54 = vector.load %arg5[%53, %c0_21] : memref<64x64xf32, #tpu.memory_space<vmem>>, vector<8x64xf32>
    tpu.vector_store %arg5[%53, %c0_21], %52 {strides = array<i32>} : memref<64x64xf32, #tpu.memory_space<vmem>>, vector<8x64xf32>,
    %c1_i32 = arith.constant 1 : i32
    %c8_i32_22 = arith.constant 8 : i32
    %55 = arith.muli %c1_i32, %c8_i32_22 : i32
    %56 = tpu.assume_multiple %55, 8 : i32
    %cst_23 = arith.constant dense<0.000000e+00> : vector<8x384xf32>
    %57 = tpu.matmul %52, %4, %cst_23 {dimension_numbers = #tpu.dot_dimension_numbers<[1], [0], [0], [1], [0, 0, 1, 1], [], []>} : vector<8x64xf32>, vector<64x384xf32>, vector<8x384xf32> -> vector<8x384xf32>
    %58 = arith.index_cast %56 : i32 to index
    %c0_24 = arith.constant 0 : index
    %59 = vector.load %arg6[%58, %c0_24] : memref<64x384xf32, #tpu.memory_space<vmem>>, vector<8x384xf32>
    %60 = vector.extract_strided_slice %59 {offsets = [0, 0], sizes = [8, 64], strides = [1, 1]} : vector<8x384xf32> to vector<8x64xf32>
    %61 = vector.extract_strided_slice %57 {offsets = [0, 0], sizes = [8, 64], strides = [1, 1]} : vector<8x384xf32> to vector<8x64xf32>
    %62 = arith.addf %60, %61 : vector<8x64xf32>
    %63 = arith.negf %62 : vector<8x64xf32>
    %64 = math.exp %63 : vector<8x64xf32>
    %cst_25 = arith.constant 1.000000e+00 : f32
    %65 = vector.broadcast %cst_25 : f32 to vector<8x64xf32>
    %66 = arith.addf %65, %64 : vector<8x64xf32>
    %67 = arith.divf %65, %66 : vector<8x64xf32>
    %68 = vector.extract_strided_slice %59 {offsets = [0, 128], sizes = [8, 64], strides = [1, 1]} : vector<8x384xf32> to vector<8x64xf32>
    %69 = vector.extract_strided_slice %57 {offsets = [0, 128], sizes = [8, 64], strides = [1, 1]} : vector<8x384xf32> to vector<8x64xf32>
    %70 = arith.addf %68, %69 : vector<8x64xf32>
    %71 = arith.negf %70 : vector<8x64xf32>
    %72 = math.exp %71 : vector<8x64xf32>
    %cst_26 = arith.constant 1.000000e+00 : f32
    %73 = vector.broadcast %cst_26 : f32 to vector<8x64xf32>
    %74 = arith.addf %73, %72 : vector<8x64xf32>
    %75 = arith.divf %73, %74 : vector<8x64xf32>
    %76 = vector.extract_strided_slice %59 {offsets = [0, 256], sizes = [8, 64], strides = [1, 1]} : vector<8x384xf32> to vector<8x64xf32>
    %77 = vector.extract_strided_slice %57 {offsets = [0, 256], sizes = [8, 64], strides = [1, 1]} : vector<8x384xf32> to vector<8x64xf32>
    %78 = arith.addf %77, %7 : vector<8x64xf32>
    %79 = arith.mulf %67, %78 : vector<8x64xf32>
    %80 = arith.addf %76, %79 : vector<8x64xf32>
    %81 = math.tanh %80 : vector<8x64xf32>
    %cst_27 = arith.constant 1.000000e+00 : f32
    %82 = vector.broadcast %cst_27 : f32 to vector<8x64xf32>
    %83 = arith.subf %82, %75 : vector<8x64xf32>
    %84 = arith.mulf %83, %81 : vector<8x64xf32>
    %85 = arith.mulf %75, %52 : vector<8x64xf32>
    %86 = arith.addf %84, %85 : vector<8x64xf32>
    %87 = arith.index_cast %56 : i32 to index
    %c0_28 = arith.constant 0 : index
    %88 = vector.load %arg5[%87, %c0_28] : memref<64x64xf32, #tpu.memory_space<vmem>>, vector<8x64xf32>
    tpu.vector_store %arg5[%87, %c0_28], %86 {strides = array<i32>} : memref<64x64xf32, #tpu.memory_space<vmem>>, vector<8x64xf32>,
    %c2_i32 = arith.constant 2 : i32
    %c8_i32_29 = arith.constant 8 : i32
    %89 = arith.muli %c2_i32, %c8_i32_29 : i32
    %90 = tpu.assume_multiple %89, 8 : i32
    %cst_30 = arith.constant dense<0.000000e+00> : vector<8x384xf32>
    %91 = tpu.matmul %86, %4, %cst_30 {dimension_numbers = #tpu.dot_dimension_numbers<[1], [0], [0], [1], [0, 0, 1, 1], [], []>} : vector<8x64xf32>, vector<64x384xf32>, vector<8x384xf32> -> vector<8x384xf32>
    %92 = arith.index_cast %90 : i32 to index
    %c0_31 = arith.constant 0 : index
    %93 = vector.load %arg6[%92, %c0_31] : memref<64x384xf32, #tpu.memory_space<vmem>>, vector<8x384xf32>
    %94 = vector.extract_strided_slice %93 {offsets = [0, 0], sizes = [8, 64], strides = [1, 1]} : vector<8x384xf32> to vector<8x64xf32>
    %95 = vector.extract_strided_slice %91 {offsets = [0, 0], sizes = [8, 64], strides = [1, 1]} : vector<8x384xf32> to vector<8x64xf32>
    %96 = arith.addf %94, %95 : vector<8x64xf32>
    %97 = arith.negf %96 : vector<8x64xf32>
    %98 = math.exp %97 : vector<8x64xf32>
    %cst_32 = arith.constant 1.000000e+00 : f32
    %99 = vector.broadcast %cst_32 : f32 to vector<8x64xf32>
    %100 = arith.addf %99, %98 : vector<8x64xf32>
    %101 = arith.divf %99, %100 : vector<8x64xf32>
    %102 = vector.extract_strided_slice %93 {offsets = [0, 128], sizes = [8, 64], strides = [1, 1]} : vector<8x384xf32> to vector<8x64xf32>
    %103 = vector.extract_strided_slice %91 {offsets = [0, 128], sizes = [8, 64], strides = [1, 1]} : vector<8x384xf32> to vector<8x64xf32>
    %104 = arith.addf %102, %103 : vector<8x64xf32>
    %105 = arith.negf %104 : vector<8x64xf32>
    %106 = math.exp %105 : vector<8x64xf32>
    %cst_33 = arith.constant 1.000000e+00 : f32
    %107 = vector.broadcast %cst_33 : f32 to vector<8x64xf32>
    %108 = arith.addf %107, %106 : vector<8x64xf32>
    %109 = arith.divf %107, %108 : vector<8x64xf32>
    %110 = vector.extract_strided_slice %93 {offsets = [0, 256], sizes = [8, 64], strides = [1, 1]} : vector<8x384xf32> to vector<8x64xf32>
    %111 = vector.extract_strided_slice %91 {offsets = [0, 256], sizes = [8, 64], strides = [1, 1]} : vector<8x384xf32> to vector<8x64xf32>
    %112 = arith.addf %111, %7 : vector<8x64xf32>
    %113 = arith.mulf %101, %112 : vector<8x64xf32>
    %114 = arith.addf %110, %113 : vector<8x64xf32>
    %115 = math.tanh %114 : vector<8x64xf32>
    %cst_34 = arith.constant 1.000000e+00 : f32
    %116 = vector.broadcast %cst_34 : f32 to vector<8x64xf32>
    %117 = arith.subf %116, %109 : vector<8x64xf32>
    %118 = arith.mulf %117, %115 : vector<8x64xf32>
    %119 = arith.mulf %109, %86 : vector<8x64xf32>
    %120 = arith.addf %118, %119 : vector<8x64xf32>
    %121 = arith.index_cast %90 : i32 to index
    %c0_35 = arith.constant 0 : index
    %122 = vector.load %arg5[%121, %c0_35] : memref<64x64xf32, #tpu.memory_space<vmem>>, vector<8x64xf32>
    tpu.vector_store %arg5[%121, %c0_35], %120 {strides = array<i32>} : memref<64x64xf32, #tpu.memory_space<vmem>>, vector<8x64xf32>,
    %c3_i32 = arith.constant 3 : i32
    %c8_i32_36 = arith.constant 8 : i32
    %123 = arith.muli %c3_i32, %c8_i32_36 : i32
    %124 = tpu.assume_multiple %123, 8 : i32
    %cst_37 = arith.constant dense<0.000000e+00> : vector<8x384xf32>
    %125 = tpu.matmul %120, %4, %cst_37 {dimension_numbers = #tpu.dot_dimension_numbers<[1], [0], [0], [1], [0, 0, 1, 1], [], []>} : vector<8x64xf32>, vector<64x384xf32>, vector<8x384xf32> -> vector<8x384xf32>
    %126 = arith.index_cast %124 : i32 to index
    %c0_38 = arith.constant 0 : index
    %127 = vector.load %arg6[%126, %c0_38] : memref<64x384xf32, #tpu.memory_space<vmem>>, vector<8x384xf32>
    %128 = vector.extract_strided_slice %127 {offsets = [0, 0], sizes = [8, 64], strides = [1, 1]} : vector<8x384xf32> to vector<8x64xf32>
    %129 = vector.extract_strided_slice %125 {offsets = [0, 0], sizes = [8, 64], strides = [1, 1]} : vector<8x384xf32> to vector<8x64xf32>
    %130 = arith.addf %128, %129 : vector<8x64xf32>
    %131 = arith.negf %130 : vector<8x64xf32>
    %132 = math.exp %131 : vector<8x64xf32>
    %cst_39 = arith.constant 1.000000e+00 : f32
    %133 = vector.broadcast %cst_39 : f32 to vector<8x64xf32>
    %134 = arith.addf %133, %132 : vector<8x64xf32>
    %135 = arith.divf %133, %134 : vector<8x64xf32>
    %136 = vector.extract_strided_slice %127 {offsets = [0, 128], sizes = [8, 64], strides = [1, 1]} : vector<8x384xf32> to vector<8x64xf32>
    %137 = vector.extract_strided_slice %125 {offsets = [0, 128], sizes = [8, 64], strides = [1, 1]} : vector<8x384xf32> to vector<8x64xf32>
    %138 = arith.addf %136, %137 : vector<8x64xf32>
    %139 = arith.negf %138 : vector<8x64xf32>
    %140 = math.exp %139 : vector<8x64xf32>
    %cst_40 = arith.constant 1.000000e+00 : f32
    %141 = vector.broadcast %cst_40 : f32 to vector<8x64xf32>
    %142 = arith.addf %141, %140 : vector<8x64xf32>
    %143 = arith.divf %141, %142 : vector<8x64xf32>
    %144 = vector.extract_strided_slice %127 {offsets = [0, 256], sizes = [8, 64], strides = [1, 1]} : vector<8x384xf32> to vector<8x64xf32>
    %145 = vector.extract_strided_slice %125 {offsets = [0, 256], sizes = [8, 64], strides = [1, 1]} : vector<8x384xf32> to vector<8x64xf32>
    %146 = arith.addf %145, %7 : vector<8x64xf32>
    %147 = arith.mulf %135, %146 : vector<8x64xf32>
    %148 = arith.addf %144, %147 : vector<8x64xf32>
    %149 = math.tanh %148 : vector<8x64xf32>
    %cst_41 = arith.constant 1.000000e+00 : f32
    %150 = vector.broadcast %cst_41 : f32 to vector<8x64xf32>
    %151 = arith.subf %150, %143 : vector<8x64xf32>
    %152 = arith.mulf %151, %149 : vector<8x64xf32>
    %153 = arith.mulf %143, %120 : vector<8x64xf32>
    %154 = arith.addf %152, %153 : vector<8x64xf32>
    %155 = arith.index_cast %124 : i32 to index
    %c0_42 = arith.constant 0 : index
    %156 = vector.load %arg5[%155, %c0_42] : memref<64x64xf32, #tpu.memory_space<vmem>>, vector<8x64xf32>
    tpu.vector_store %arg5[%155, %c0_42], %154 {strides = array<i32>} : memref<64x64xf32, #tpu.memory_space<vmem>>, vector<8x64xf32>,
    %c4_i32 = arith.constant 4 : i32
    %c8_i32_43 = arith.constant 8 : i32
    %157 = arith.muli %c4_i32, %c8_i32_43 : i32
    %158 = tpu.assume_multiple %157, 8 : i32
    %cst_44 = arith.constant dense<0.000000e+00> : vector<8x384xf32>
    %159 = tpu.matmul %154, %4, %cst_44 {dimension_numbers = #tpu.dot_dimension_numbers<[1], [0], [0], [1], [0, 0, 1, 1], [], []>} : vector<8x64xf32>, vector<64x384xf32>, vector<8x384xf32> -> vector<8x384xf32>
    %160 = arith.index_cast %158 : i32 to index
    %c0_45 = arith.constant 0 : index
    %161 = vector.load %arg6[%160, %c0_45] : memref<64x384xf32, #tpu.memory_space<vmem>>, vector<8x384xf32>
    %162 = vector.extract_strided_slice %161 {offsets = [0, 0], sizes = [8, 64], strides = [1, 1]} : vector<8x384xf32> to vector<8x64xf32>
    %163 = vector.extract_strided_slice %159 {offsets = [0, 0], sizes = [8, 64], strides = [1, 1]} : vector<8x384xf32> to vector<8x64xf32>
    %164 = arith.addf %162, %163 : vector<8x64xf32>
    %165 = arith.negf %164 : vector<8x64xf32>
    %166 = math.exp %165 : vector<8x64xf32>
    %cst_46 = arith.constant 1.000000e+00 : f32
    %167 = vector.broadcast %cst_46 : f32 to vector<8x64xf32>
    %168 = arith.addf %167, %166 : vector<8x64xf32>
    %169 = arith.divf %167, %168 : vector<8x64xf32>
    %170 = vector.extract_strided_slice %161 {offsets = [0, 128], sizes = [8, 64], strides = [1, 1]} : vector<8x384xf32> to vector<8x64xf32>
    %171 = vector.extract_strided_slice %159 {offsets = [0, 128], sizes = [8, 64], strides = [1, 1]} : vector<8x384xf32> to vector<8x64xf32>
    %172 = arith.addf %170, %171 : vector<8x64xf32>
    %173 = arith.negf %172 : vector<8x64xf32>
    %174 = math.exp %173 : vector<8x64xf32>
    %cst_47 = arith.constant 1.000000e+00 : f32
    %175 = vector.broadcast %cst_47 : f32 to vector<8x64xf32>
    %176 = arith.addf %175, %174 : vector<8x64xf32>
    %177 = arith.divf %175, %176 : vector<8x64xf32>
    %178 = vector.extract_strided_slice %161 {offsets = [0, 256], sizes = [8, 64], strides = [1, 1]} : vector<8x384xf32> to vector<8x64xf32>
    %179 = vector.extract_strided_slice %159 {offsets = [0, 256], sizes = [8, 64], strides = [1, 1]} : vector<8x384xf32> to vector<8x64xf32>
    %180 = arith.addf %179, %7 : vector<8x64xf32>
    %181 = arith.mulf %169, %180 : vector<8x64xf32>
    %182 = arith.addf %178, %181 : vector<8x64xf32>
    %183 = math.tanh %182 : vector<8x64xf32>
    %cst_48 = arith.constant 1.000000e+00 : f32
    %184 = vector.broadcast %cst_48 : f32 to vector<8x64xf32>
    %185 = arith.subf %184, %177 : vector<8x64xf32>
    %186 = arith.mulf %185, %183 : vector<8x64xf32>
    %187 = arith.mulf %177, %154 : vector<8x64xf32>
    %188 = arith.addf %186, %187 : vector<8x64xf32>
    %189 = arith.index_cast %158 : i32 to index
    %c0_49 = arith.constant 0 : index
    %190 = vector.load %arg5[%189, %c0_49] : memref<64x64xf32, #tpu.memory_space<vmem>>, vector<8x64xf32>
    tpu.vector_store %arg5[%189, %c0_49], %188 {strides = array<i32>} : memref<64x64xf32, #tpu.memory_space<vmem>>, vector<8x64xf32>,
    %c5_i32 = arith.constant 5 : i32
    %c8_i32_50 = arith.constant 8 : i32
    %191 = arith.muli %c5_i32, %c8_i32_50 : i32
    %192 = tpu.assume_multiple %191, 8 : i32
    %cst_51 = arith.constant dense<0.000000e+00> : vector<8x384xf32>
    %193 = tpu.matmul %188, %4, %cst_51 {dimension_numbers = #tpu.dot_dimension_numbers<[1], [0], [0], [1], [0, 0, 1, 1], [], []>} : vector<8x64xf32>, vector<64x384xf32>, vector<8x384xf32> -> vector<8x384xf32>
    %194 = arith.index_cast %192 : i32 to index
    %c0_52 = arith.constant 0 : index
    %195 = vector.load %arg6[%194, %c0_52] : memref<64x384xf32, #tpu.memory_space<vmem>>, vector<8x384xf32>
    %196 = vector.extract_strided_slice %195 {offsets = [0, 0], sizes = [8, 64], strides = [1, 1]} : vector<8x384xf32> to vector<8x64xf32>
    %197 = vector.extract_strided_slice %193 {offsets = [0, 0], sizes = [8, 64], strides = [1, 1]} : vector<8x384xf32> to vector<8x64xf32>
    %198 = arith.addf %196, %197 : vector<8x64xf32>
    %199 = arith.negf %198 : vector<8x64xf32>
    %200 = math.exp %199 : vector<8x64xf32>
    %cst_53 = arith.constant 1.000000e+00 : f32
    %201 = vector.broadcast %cst_53 : f32 to vector<8x64xf32>
    %202 = arith.addf %201, %200 : vector<8x64xf32>
    %203 = arith.divf %201, %202 : vector<8x64xf32>
    %204 = vector.extract_strided_slice %195 {offsets = [0, 128], sizes = [8, 64], strides = [1, 1]} : vector<8x384xf32> to vector<8x64xf32>
    %205 = vector.extract_strided_slice %193 {offsets = [0, 128], sizes = [8, 64], strides = [1, 1]} : vector<8x384xf32> to vector<8x64xf32>
    %206 = arith.addf %204, %205 : vector<8x64xf32>
    %207 = arith.negf %206 : vector<8x64xf32>
    %208 = math.exp %207 : vector<8x64xf32>
    %cst_54 = arith.constant 1.000000e+00 : f32
    %209 = vector.broadcast %cst_54 : f32 to vector<8x64xf32>
    %210 = arith.addf %209, %208 : vector<8x64xf32>
    %211 = arith.divf %209, %210 : vector<8x64xf32>
    %212 = vector.extract_strided_slice %195 {offsets = [0, 256], sizes = [8, 64], strides = [1, 1]} : vector<8x384xf32> to vector<8x64xf32>
    %213 = vector.extract_strided_slice %193 {offsets = [0, 256], sizes = [8, 64], strides = [1, 1]} : vector<8x384xf32> to vector<8x64xf32>
    %214 = arith.addf %213, %7 : vector<8x64xf32>
    %215 = arith.mulf %203, %214 : vector<8x64xf32>
    %216 = arith.addf %212, %215 : vector<8x64xf32>
    %217 = math.tanh %216 : vector<8x64xf32>
    %cst_55 = arith.constant 1.000000e+00 : f32
    %218 = vector.broadcast %cst_55 : f32 to vector<8x64xf32>
    %219 = arith.subf %218, %211 : vector<8x64xf32>
    %220 = arith.mulf %219, %217 : vector<8x64xf32>
    %221 = arith.mulf %211, %188 : vector<8x64xf32>
    %222 = arith.addf %220, %221 : vector<8x64xf32>
    %223 = arith.index_cast %192 : i32 to index
    %c0_56 = arith.constant 0 : index
    %224 = vector.load %arg5[%223, %c0_56] : memref<64x64xf32, #tpu.memory_space<vmem>>, vector<8x64xf32>
    tpu.vector_store %arg5[%223, %c0_56], %222 {strides = array<i32>} : memref<64x64xf32, #tpu.memory_space<vmem>>, vector<8x64xf32>,
    %c6_i32 = arith.constant 6 : i32
    %c8_i32_57 = arith.constant 8 : i32
    %225 = arith.muli %c6_i32, %c8_i32_57 : i32
    %226 = tpu.assume_multiple %225, 8 : i32
    %cst_58 = arith.constant dense<0.000000e+00> : vector<8x384xf32>
    %227 = tpu.matmul %222, %4, %cst_58 {dimension_numbers = #tpu.dot_dimension_numbers<[1], [0], [0], [1], [0, 0, 1, 1], [], []>} : vector<8x64xf32>, vector<64x384xf32>, vector<8x384xf32> -> vector<8x384xf32>
    %228 = arith.index_cast %226 : i32 to index
    %c0_59 = arith.constant 0 : index
    %229 = vector.load %arg6[%228, %c0_59] : memref<64x384xf32, #tpu.memory_space<vmem>>, vector<8x384xf32>
    %230 = vector.extract_strided_slice %229 {offsets = [0, 0], sizes = [8, 64], strides = [1, 1]} : vector<8x384xf32> to vector<8x64xf32>
    %231 = vector.extract_strided_slice %227 {offsets = [0, 0], sizes = [8, 64], strides = [1, 1]} : vector<8x384xf32> to vector<8x64xf32>
    %232 = arith.addf %230, %231 : vector<8x64xf32>
    %233 = arith.negf %232 : vector<8x64xf32>
    %234 = math.exp %233 : vector<8x64xf32>
    %cst_60 = arith.constant 1.000000e+00 : f32
    %235 = vector.broadcast %cst_60 : f32 to vector<8x64xf32>
    %236 = arith.addf %235, %234 : vector<8x64xf32>
    %237 = arith.divf %235, %236 : vector<8x64xf32>
    %238 = vector.extract_strided_slice %229 {offsets = [0, 128], sizes = [8, 64], strides = [1, 1]} : vector<8x384xf32> to vector<8x64xf32>
    %239 = vector.extract_strided_slice %227 {offsets = [0, 128], sizes = [8, 64], strides = [1, 1]} : vector<8x384xf32> to vector<8x64xf32>
    %240 = arith.addf %238, %239 : vector<8x64xf32>
    %241 = arith.negf %240 : vector<8x64xf32>
    %242 = math.exp %241 : vector<8x64xf32>
    %cst_61 = arith.constant 1.000000e+00 : f32
    %243 = vector.broadcast %cst_61 : f32 to vector<8x64xf32>
    %244 = arith.addf %243, %242 : vector<8x64xf32>
    %245 = arith.divf %243, %244 : vector<8x64xf32>
    %246 = vector.extract_strided_slice %229 {offsets = [0, 256], sizes = [8, 64], strides = [1, 1]} : vector<8x384xf32> to vector<8x64xf32>
    %247 = vector.extract_strided_slice %227 {offsets = [0, 256], sizes = [8, 64], strides = [1, 1]} : vector<8x384xf32> to vector<8x64xf32>
    %248 = arith.addf %247, %7 : vector<8x64xf32>
    %249 = arith.mulf %237, %248 : vector<8x64xf32>
    %250 = arith.addf %246, %249 : vector<8x64xf32>
    %251 = math.tanh %250 : vector<8x64xf32>
    %cst_62 = arith.constant 1.000000e+00 : f32
    %252 = vector.broadcast %cst_62 : f32 to vector<8x64xf32>
    %253 = arith.subf %252, %245 : vector<8x64xf32>
    %254 = arith.mulf %253, %251 : vector<8x64xf32>
    %255 = arith.mulf %245, %222 : vector<8x64xf32>
    %256 = arith.addf %254, %255 : vector<8x64xf32>
    %257 = arith.index_cast %226 : i32 to index
    %c0_63 = arith.constant 0 : index
    %258 = vector.load %arg5[%257, %c0_63] : memref<64x64xf32, #tpu.memory_space<vmem>>, vector<8x64xf32>
    tpu.vector_store %arg5[%257, %c0_63], %256 {strides = array<i32>} : memref<64x64xf32, #tpu.memory_space<vmem>>, vector<8x64xf32>,
    %c7_i32 = arith.constant 7 : i32
    %c8_i32_64 = arith.constant 8 : i32
    %259 = arith.muli %c7_i32, %c8_i32_64 : i32
    %260 = tpu.assume_multiple %259, 8 : i32
    %cst_65 = arith.constant dense<0.000000e+00> : vector<8x384xf32>
    %261 = tpu.matmul %256, %4, %cst_65 {dimension_numbers = #tpu.dot_dimension_numbers<[1], [0], [0], [1], [0, 0, 1, 1], [], []>} : vector<8x64xf32>, vector<64x384xf32>, vector<8x384xf32> -> vector<8x384xf32>
    %262 = arith.index_cast %260 : i32 to index
    %c0_66 = arith.constant 0 : index
    %263 = vector.load %arg6[%262, %c0_66] : memref<64x384xf32, #tpu.memory_space<vmem>>, vector<8x384xf32>
    %264 = vector.extract_strided_slice %263 {offsets = [0, 0], sizes = [8, 64], strides = [1, 1]} : vector<8x384xf32> to vector<8x64xf32>
    %265 = vector.extract_strided_slice %261 {offsets = [0, 0], sizes = [8, 64], strides = [1, 1]} : vector<8x384xf32> to vector<8x64xf32>
    %266 = arith.addf %264, %265 : vector<8x64xf32>
    %267 = arith.negf %266 : vector<8x64xf32>
    %268 = math.exp %267 : vector<8x64xf32>
    %cst_67 = arith.constant 1.000000e+00 : f32
    %269 = vector.broadcast %cst_67 : f32 to vector<8x64xf32>
    %270 = arith.addf %269, %268 : vector<8x64xf32>
    %271 = arith.divf %269, %270 : vector<8x64xf32>
    %272 = vector.extract_strided_slice %263 {offsets = [0, 128], sizes = [8, 64], strides = [1, 1]} : vector<8x384xf32> to vector<8x64xf32>
    %273 = vector.extract_strided_slice %261 {offsets = [0, 128], sizes = [8, 64], strides = [1, 1]} : vector<8x384xf32> to vector<8x64xf32>
    %274 = arith.addf %272, %273 : vector<8x64xf32>
    %275 = arith.negf %274 : vector<8x64xf32>
    %276 = math.exp %275 : vector<8x64xf32>
    %cst_68 = arith.constant 1.000000e+00 : f32
    %277 = vector.broadcast %cst_68 : f32 to vector<8x64xf32>
    %278 = arith.addf %277, %276 : vector<8x64xf32>
    %279 = arith.divf %277, %278 : vector<8x64xf32>
    %280 = vector.extract_strided_slice %263 {offsets = [0, 256], sizes = [8, 64], strides = [1, 1]} : vector<8x384xf32> to vector<8x64xf32>
    %281 = vector.extract_strided_slice %261 {offsets = [0, 256], sizes = [8, 64], strides = [1, 1]} : vector<8x384xf32> to vector<8x64xf32>
    %282 = arith.addf %281, %7 : vector<8x64xf32>
    %283 = arith.mulf %271, %282 : vector<8x64xf32>
    %284 = arith.addf %280, %283 : vector<8x64xf32>
    %285 = math.tanh %284 : vector<8x64xf32>
    %cst_69 = arith.constant 1.000000e+00 : f32
    %286 = vector.broadcast %cst_69 : f32 to vector<8x64xf32>
    %287 = arith.subf %286, %279 : vector<8x64xf32>
    %288 = arith.mulf %287, %285 : vector<8x64xf32>
    %289 = arith.mulf %279, %256 : vector<8x64xf32>
    %290 = arith.addf %288, %289 : vector<8x64xf32>
    %291 = arith.index_cast %260 : i32 to index
    %c0_70 = arith.constant 0 : index
    %292 = vector.load %arg5[%291, %c0_70] : memref<64x64xf32, #tpu.memory_space<vmem>>, vector<8x64xf32>
    tpu.vector_store %arg5[%291, %c0_70], %290 {strides = array<i32>} : memref<64x64xf32, #tpu.memory_space<vmem>>, vector<8x64xf32>,
    %c8_i32_71 = arith.constant 8 : i32
    %c0_72 = arith.constant 0 : index
    %c0_73 = arith.constant 0 : index
    %293 = vector.load %arg5[%c0_72, %c0_73] : memref<64x64xf32, #tpu.memory_space<vmem>>, vector<64x64xf32>
    %cst_74 = arith.constant dense<0.000000e+00> : vector<64x256xf32>
    %294 = tpu.matmul %293, %8, %cst_74 {dimension_numbers = #tpu.dot_dimension_numbers<[1], [0], [0], [1], [0, 0, 1, 1], [], []>} : vector<64x64xf32>, vector<64x256xf32>, vector<64x256xf32> -> vector<64x256xf32>
    %295 = vector.broadcast %9 : vector<1x256xf32> to vector<64x256xf32>
    %296 = arith.addf %294, %295 : vector<64x256xf32>
    %297 = vector.extract_strided_slice %296 {offsets = [0, 0], sizes = [64, 32], strides = [1, 1]} : vector<64x256xf32> to vector<64x32xf32>
    %298 = vector.extract_strided_slice %296 {offsets = [0, 128], sizes = [64, 32], strides = [1, 1]} : vector<64x256xf32> to vector<64x32xf32>
    %c0_75 = arith.constant 0 : index
    %c0_76 = arith.constant 0 : index
    %299 = vector.load %arg2[%c0_75, %c0_76] : memref<64x32xf32, #tpu.memory_space<vmem>>, vector<64x32xf32>
    %cst_77 = arith.constant 5.000000e-01 : f32
    %300 = vector.broadcast %cst_77 : f32 to vector<64x32xf32>
    %301 = arith.mulf %300, %298 : vector<64x32xf32>
    %302 = math.exp %301 : vector<64x32xf32>
    %303 = arith.mulf %299, %302 : vector<64x32xf32>
    %304 = arith.addf %297, %303 : vector<64x32xf32>
    %cst_78 = arith.constant 0.000000e+00 : f32
    %305 = vector.broadcast %cst_78 : f32 to vector<64x32xf32>
    %306 = tpu.concatenate %297, %298, %304, %305 in 1 : vector<64x32xf32>, vector<64x32xf32>, vector<64x32xf32>, vector<64x32xf32> -> vector<64x128xf32>
    %c0_79 = arith.constant 0 : index
    %c0_80 = arith.constant 0 : index
    %307 = vector.load %arg4[%c0_79, %c0_80] : memref<64x128xf32, #tpu.memory_space<vmem>>, vector<64x128xf32>
    tpu.vector_store %arg4[%c0_79, %c0_80], %306 {strides = array<i32>} : memref<64x128xf32, #tpu.memory_space<vmem>>, vector<64x128xf32>,
    return
  }
}

</mosaic_0001>

<bundles_post_ra>
// kernel: tpu_custom_call.1
= control target key start
LH: loop header
LB: loop body
LE: loop exit
PB: predicated region body
PF: predicated region fallthrough
CT: control target
= control target key end

     0   :  { %11 = vsyncpa [#allocation4], 0  ;;  %s3594_s0 = inlined_call_operand.vmem [shape: f32[64,8], index: 0, kind: input, shape index: {}]   ;;  %s3595_s1 = inlined_call_operand.vmem [shape: f32[8,64], index: 1, kind: input, shape index: {}]   ;;  %s3596_s2 = inlined_call_operand.vmem [shape: f32[64,32], index: 2, kind: input, shape index: {}]   ;;  %s3597_s3 = inlined_call_operand.hbm [shape: f32[176,384], index: 3, kind: input, shape index: {}]   ;;  %s3598_s4 = inlined_call_operand.hbm [shape: f32[64,128], index: 4, kind: output, shape index: {0}]   ;;  %s3599_s5 = inlined_call_operand.hbm [shape: f32[64,64], index: 5, kind: output, shape index: {1}]  }
   0x1   :  { %12 = vsyncpa [#allocation5], 0 }
   0x2   :  { %13 = vsyncpa [#allocation8], 0  ;;  %s3068_s18 = smov [#allocation3]   ;;  %s2996_s22 = scalar_lea.hbm %s3597_s3, 8448 }
   0x3   :  { %s25_s19 = sshll.u32 %s3068_s18, 4  ;;  %p2997_p0 = scmp.ne.s32.totalorder %s3597_s3, %s2996_s22  ;;  %s26_s19 = int_to_ptr.vmem [resolvable:$true] %s25_s19 }
   0x4   :  { %p3000_p1 = scmp.lt.u32.totalorder %s2996_s22, %s3597_s3 }
   0x6   :  { %p3002_p2 = pnand %p3000_p1, %p2997_p0 }
   0x8   :  { %3005 = shalt.err (!%p3002_p2)
}
   0x9   :  { %s3006_s27 = scalar_lea.vmem %s26_s19, 8448  ;;  %p3011_p4 = scmp.lt.s32.totalorder %s26_s19, %s26_s19 }
   0xa   :  { %p3007_p3 = scmp.ne.s32.totalorder %s26_s19, %s3006_s27  ;;  %p3012_p5 = scmp.lt.s32.totalorder %s3006_s27, %s3006_s27 }
   0xc   :  { %p3013_p6 = por %p3012_p5, %p3011_p4 }
   0xe   :  { %p3014_p7 = pnand %p3013_p6, %p3007_p3 }
  0x10   :  { %3017 = shalt.err (!%p3014_p7)
}
  0x11   :  { %s3069_s28 = smov 384   ;;  %s3070_s29 = smov 24  }
  0x12   :  { %31 = dma.hbm_to_vmem [thread:$0]  %s3597_s3, 8448, %s26_s19, [#allocation4], %s3069_s28, %s3069_s28, %s3070_s29  }
  0x13   :  { %3062 = dma.done.wait [#allocation4], 8448  }
  0x14   :  { %3063 = vsyncadd [#allocation4], 4294958848  ;;  %vm102_vm0 = vcmask 64512   ;;  %v35_v0 = vld [vmem:[#allocation3 + $0x138] sm:$0xff]  ;;  %v94_v1 = vld [vmem:[%s3594_s0] sm:$0xff]  ;;  %v3071_v23 = vmov 0.0  }
  0x15   :  { %v95_v2 = vld [vmem:[%s3594_s0 + $0x8] sm:$0xff]  ;;  %2414 = vmatprep.subr.mxu0 %v35_v0  ;;  %2416 = vmatprep.mubr.msk.f32.mxu0 %vm102_vm0, %v94_v1  ;;  %v96_v3 = vld [vmem:[%s3594_s0 + $0x10] sm:$0xff]  ;;  %v41_v5 = vld [vmem:[#allocation3 + $0xe0] sm:$0xff]  ;;  %v3072_v28 = vmov 0.0|0.0   ;;  %vm3073_vm1 = vmmov 0   ;;  %vm524_vm2 = vcmask 523264  }
  0x16   :  { %2415 = vmatpush3.msra.mxu0 %v35_v0  ;;  %v38_v4 = vld [vmem:[#allocation3 + $0xc8] sm:$0xff]  ;;  %v37_v6 = vld [vmem:[#allocation3 + $0xc0] sm:$0xff]  ;;  %v97_v7 = vld [vmem:[%s3594_s0 + $0x18] sm:$0xff]  ;;  %345 = vmatprep.mubr.f32.mxu1 %v3071_v23  ;;  %vm256_vm3 = vcmask 261120   ;;  %s3075_s27 = smov 64   ;;  %vm2200_vm4 = vcmask 785408  }
  0x17   :  { %2417 = vmatmul.mubr.msk.f32.vlgmr.msra.gmra.mrb[0].mxu0 %vm102_vm0, %v95_v2  ;;  %v2600_v8 = vpack.c.bf16 %v41_v5, %v38_v4  ;;  %v40_v9 = vld [vmem:[#allocation3 + $0xd8] sm:$0xff]  ;;  %v98_v10 = vld [vmem:[%s3594_s0 + $0x20] sm:$0xff]  ;;  %v99_v12 = vld [vmem:[%s3594_s0 + $0x28] sm:$0xff]  ;;  %2632 = vmatprep.subr.bf16.mxu0 %v3072_v28  ;;  %s3076_s3 = smov [#allocation7]  }
  0x18   :  { %2419 = vmatprep.mubr.msk.f32.mxu0 %vm102_vm0, %v96_v3  ;;  %v2602_v11 = vpack.c.bf16 %v40_v9, %v37_v6  ;;  %v100_v13 = vld [vmem:[%s3594_s0 + $0x30] sm:$0xff]  ;;  %v101_v14 = vld [vmem:[%s3594_s0 + $0x38] sm:$0xff]  ;;  %v46_v19 = vld [vmem:[#allocation3 + $0x108] sm:$0xff]  ;;  %s2234_s13 = sshll.u32 %s3076_s3, 4  ;;  %s2235_s13 = int_to_ptr.vmem [resolvable:$true] %s2234_s13 }
  0x19   :  { %2601 = vmatprep.subr.bf16.mxu1 %v2600_v8  ;;  %v44_v15 = vld [vmem:[#allocation3 + $0xf8] sm:$0xff]  ;;  %v47_v16 = vld [vmem:[#allocation3 + $0x110] sm:$0xff]  ;;  %v42_v22 = vld [vmem:[#allocation3 + $0xe8] sm:$0xff]  ;;  %s3018_s16 = scalar_lea.vmem %s2235_s13, 1024  ;;  %p3023_p9 = scmp.lt.s32.totalorder %s2235_s13, %s2235_s13 }
  0x1a   :  { %2603 = vmatpush1.bf16.msra.mxu1 %v2602_v11  ;;  %v2604_v17 = vpack.c.bf16 %v47_v16, %v44_v15  ;;  %v43_v18 = vld [vmem:[#allocation3 + $0xf0] sm:$0xff]  ;;  %v56_v26 = vld [vmem:[#allocation3 + $0x28] sm:$0xff]  ;;  %v59_v27 = vld [vmem:[#allocation3 + $0x40] sm:$0xff]  ;;  %p3019_p8 = scmp.ne.s32.totalorder %s2235_s13, %s3018_s16  ;;  %p3024_p10 = scmp.lt.s32.totalorder %s3018_s16, %s3018_s16 }
  0x1b   :  { %2420 = vmatmul.mubr.msk.f32.gmra.mrb[2].mxu0 %vm102_vm0, %v97_v7  ;;  %v2606_v20 = vpack.c.bf16 %v46_v19, %v43_v18  ;;  %v39_v21 = vld [vmem:[#allocation3 + $0xd0] sm:$0xff]  ;;  %v62_v30 = vld [vmem:[#allocation3 + $0x58] sm:$0xff]  ;;  %v68_v33 = vld [vmem:[#allocation3 + $0x88] sm:$0xff] }
  0x1c   :  { %2422 = vmatprep.mubr.msk.f32.mxu0 %vm102_vm0, %v98_v10  ;;  %2605 = vmatprep.subr.bf16.mxu1 %v2604_v17  ;;  %v2608_v24 = vpack.c.bf16 %v42_v22, %v39_v21  ;;  %v53_v25 = vld [vmem:[#allocation3 + $0x10] sm:$0xff]  ;;  %v3161_v31 = vpack.c.bf16 %v62_v30, %v59_v27  ;;  %v71_v35 = vld [vmem:[#allocation3 + $0xa0] sm:$0xff]  ;;  %v74_v36 = vld [vmem:[#allocation3 + $0xb8] sm:$0xff]  ;;  %p3025_p11 = por %p3024_p10, %p3023_p9 }
  0x1d   :  { %v3156_v29 = vpack.c.bf16 %v56_v26, %v53_v25  ;;  %v65_v32 = vld [vmem:[#allocation3 + $0x70] sm:$0xff]  ;;  %v3169_v37 = vpack.c.bf16 %v74_v36, %v71_v35  ;;  %v3177_v38 = vld [vmem:[%s3595_s1] sm:$0xff]  ;;  %v48_v43 = vld [vmem:[#allocation3 + $0x118] sm:$0xff]  ;;  %s3074_s1 = smov 32  }
  0x1e   :  { %2607 = vmatpush1.bf16.msra.mxu1 %v2606_v20  ;;  %v3165_v34 = vpack.c.bf16 %v68_v33, %v65_v32  ;;  %v36_v39 = vld [vmem:[#allocation3 + $0x122] ss:$0 sm:$0xff]  ;;  %v52_v50 = vld [vmem:[#allocation3 + $0x8] sm:$0xff]  ;;  %v54_v7 = vld [vmem:[#allocation3 + $0x18] sm:$0xff]  ;;  %v241_v33 = vlaneseq  ;;  %p3026_p12 = pnand %p3025_p11, %p3019_p8 }
  0x1f   :  { %2423 = vmatmul.mubr.msk.f32.gmra.mrb[4].mxu0 %vm102_vm0, %v99_v12  ;;  %2609 = vmatprep.subr.bf16.mxu1 %v2608_v24  ;;  %v45_v42 = vld [vmem:[#allocation3 + $0x100] sm:$0xff]  ;;  %v58_v8 = vld [vmem:[#allocation3 + $0x38] sm:$0xff]  ;;  %v61_v9 = vld [vmem:[#allocation3 + $0x50] sm:$0xff] }
  0x20   :  { %2425 = vmatprep.mubr.msk.f32.mxu0 %vm102_vm0, %v100_v13  ;;  %2634 = vmatpush3.bf16.msra.mxu0 %v3156_v29  ;;  %v2612_v48 = vpack.c.bf16 %v48_v43, %v45_v42  ;;  %v55_v51 = vld [vmem:[#allocation3 + $0x20] sm:$0xff]  ;;  %v3212_v11 = vpack.c.bf16 %v61_v9, %v58_v8  ;;  %v57_v12 = vld [vmem:[#allocation3 + $0x30] sm:$0xff]  ;;  %v60_v13 = vld [vmem:[#allocation3 + $0x48] sm:$0xff]  ;;  %v3251_v35 = vshrl.u32 %v241_v33, 7 }
  0x21   :  { %2635 = vmatprep.subr.bf16.mxu0 %v3072_v28  ;;  %v3193_v55 = vpack.c.bf16 %v55_v51, %v52_v50  ;;  %v51_v6 = vld [vmem:[#allocation3] sm:$0xff]  ;;  %v3217_v16 = vpack.c.bf16 %v60_v13, %v57_v12  ;;  %v66_v19 = vld [vmem:[#allocation3 + $0x78] sm:$0xff]  ;;  %v73_v21 = vld [vmem:[#allocation3 + $0xb0] sm:$0xff] }
  0x22   :  { %v3210_v10 = vpack.c.bf16 %v54_v7, %v51_v6  ;;  %v67_v15 = vld [vmem:[#allocation3 + $0x80] sm:$0xff]  ;;  %v70_v20 = vld [vmem:[#allocation3 + $0x98] sm:$0xff]  ;;  %v69_v25 = vld [vmem:[#allocation3 + $0x90] sm:$0xff]  ;;  %v251_v36 = vsub.s32 2, %v3251_v35  ;;  %v243_v51 = vsub.s32 0, %v3251_v35 }
  0x23   :  { %2426 = vmatmul.mubr.msk.f32.gmra.mrb[6].mxu0 %vm102_vm0, %v101_v14  ;;  %v64_v14 = vld [vmem:[#allocation3 + $0x68] sm:$0xff]  ;;  %v63_v18 = vld [vmem:[#allocation3 + $0x60] sm:$0xff] }
  0x24   :  { %2464 = vmatprep.mubr.msk.f32.mxu0 %vm3073_vm1, %v3071_v23  ;;  %2637 = vmatpush3.bf16.msra.mxu0 %v3161_v31  ;;  %v3220_v17 = vpack.c.bf16 %v67_v15, %v64_v14  ;;  %v3225_v22 = vpack.c.bf16 %v66_v19, %v63_v18  ;;  %v72_v26 = vld [vmem:[#allocation3 + $0xa8] sm:$0xff]  ;;  %v3280_v6 = vld [vmem:[#allocation3 + $0x121] ss:$0 sm:$0xff] }
  0x25   :  { %2638 = vmatprep.subr.bf16.mxu0 %v3072_v28  ;;  %v3233_v27 = vpack.c.bf16 %v72_v26, %v69_v25 }
  0x28   :  { %2640 = vmatpush3.bf16.msra.mxu0 %v3165_v34 }
  0x29   :  { %2641 = vmatprep.subr.bf16.mxu0 %v3072_v28 }
  0x2c   :  { %2643 = vmatpush3.bf16.msra.mxu0 %v3169_v37 }
  0x2d   :  { %2660 = vmatprep.subr.bf16.mxu0 %v3072_v28 }
  0x2f   :  { %2465 = vmatmul.mubr.msk.f32.vlgmr.msra.gmra.mrb[8].mxu0 %vm524_vm2, %v3177_v38 }
  0x30   :  { %2662 = vmatpush3.bf16.msra.mxu0 %v3156_v29  ;;  %2483 = vmatprep.mubr.msk.f32.mxu0 %vm3073_vm1, %v3071_v23 }
  0x31   :  { %2663 = vmatprep.subr.bf16.mxu0 %v3072_v28 }
  0x34   :  { %2665 = vmatpush3.bf16.msra.mxu0 %v3161_v31 }
  0x35   :  { %2666 = vmatprep.subr.bf16.mxu0 %v3072_v28 }
  0x38   :  { %2668 = vmatpush3.bf16.msra.mxu0 %v3165_v34 }
  0x39   :  { %2669 = vmatprep.subr.bf16.mxu0 %v3072_v28 }
  0x3c   :  { %2671 = vmatpush3.bf16.msra.mxu0 %v3169_v37 }
  0x3d   :  { %2688 = vmatprep.subr.bf16.mxu0 %v3072_v28 }
  0xea   :  { %v2418_v40 = vpop.f32.mrb[0].mxu0 }
  0xeb   :  { %v193_v41 = vpop.f32.mrb[1].mxu0  ;;  %v199_v45 = vadd.f32 %v2418_v40, %v36_v39 }
  0xec   :  { %v194_v44 = vadd.f32 %v193_v41, %v36_v39 }
  0xed   :  { %v233_v53 = vmax.f32 %v199_v45, 0.0 }
  0xee   :  { %v232_v46 = vmax.f32 %v194_v44, 0.0  ;;  %v2421_v47 = vpop.f32.mrb[2].mxu0 }
  0xef   :  { %v203_v49 = vpop.f32.mrb[3].mxu0  ;;  %v209_v58 = vadd.f32 %v2421_v47, %v36_v39 }
  0xf0   :  { %2265 = vmatmul.mubr.msk.f32.vlgmr.msra.gmra.mrb[0].mxu1 %vm256_vm3, %v232_v46  ;;  %v204_v52 = vadd.f32 %v203_v49, %v36_v39 }
  0xf1   :  { %2611 = vmatpush3.bf16.msra.mxu1 %v2608_v24  ;;  %351 = vmatprep.mubr.f32.mxu1 %v3071_v23  ;;  %v235_v62 = vmax.f32 %v209_v58, 0.0  ;;  %v3228_v24 = vpack.c.bf16 %v73_v21, %v70_v20 }
  0xf2   :  { %v2424_v54 = vpop.f32.mrb[4].mxu0  ;;  %2613 = vmatprep.subr.bf16.mxu1 %v2612_v48  ;;  %v234_v57 = vmax.f32 %v204_v52, 0.0 }
  0xf3   :  { %v213_v56 = vpop.f32.mrb[5].mxu0  ;;  %v219_v0 = vadd.f32 %v2424_v54, %v36_v39  ;;  %v247_v54 = vsub.s32 1, %v3251_v35 }
  0xf4   :  { %2266 = vmatmul.mubr.msk.f32.gmra.mrb[2].mxu1 %vm256_vm3, %v233_v53  ;;  %v214_v61 = vadd.f32 %v213_v56, %v36_v39 }
  0xf5   :  { %357 = vmatprep.mubr.f32.mxu1 %v3071_v23  ;;  %2615 = vmatpush3.bf16.msra.mxu1 %v2612_v48  ;;  %v237_v2 = vmax.f32 %v219_v0, 0.0 }
  0xf6   :  { %v2427_v59 = vpop.f32.mrb[6].mxu0  ;;  %2617 = vmatprep.subr.bf16.mxu1 %v3193_v55  ;;  %v236_v63 = vmax.f32 %v214_v61, 0.0 }
  0xf7   :  { %v223_v60 = vpop.f32.mrb[7].mxu0  ;;  %v229_v4 = vadd.f32 %v2427_v59, %v36_v39 }
  0xf8   :  { %2267 = vmatmul.mubr.msk.f32.gmra.mrb[4].mxu1 %vm256_vm3, %v234_v57  ;;  %v224_v1 = vadd.f32 %v223_v60, %v36_v39  ;;  %v50_v39 = vld [vmem:[#allocation3 + $0x120] ss:$8 sm:$0x7] }
  0xf9   :  { %363 = vmatprep.mubr.f32.mxu1 %v3071_v23  ;;  %v239_v5 = vmax.f32 %v229_v4, 0.0  ;;  %v252_v40 = vrot.slane %v50_v39, %v251_v36  ;;  %v3270_v58 = vrot.slane %v50_v39, %v243_v51  ;;  %v3276_v61 = vrot.slane %v50_v39, %v247_v54 }
  0xfa   :  { %v238_v3 = vmax.f32 %v224_v1, 0.0 }
  0xfc   :  { %2268 = vmatmul.mubr.msk.f32.gmra.mrb[6].mxu1 %vm256_vm3, %v235_v62 }
  0xfd   :  { %369 = vmatprep.mubr.f32.mxu1 %v3071_v23 }
 0x100   :  { %2269 = vmatmul.mubr.msk.f32.gmra.mrb[8].mxu1 %vm256_vm3, %v236_v63 }
 0x101   :  { %375 = vmatprep.mubr.f32.mxu1 %v3071_v23 }
 0x102   :  { %v665_v30 = vpop.f32.mrb[8].mxu0 }
 0x103   :  { %v2466_v32 = vpop.f32.mrb[9].mxu0  ;;  %v689_v8 = vadd.f32 %v665_v30, %v3280_v6 }
 0x104   :  { %2270 = vmatmul.mubr.msk.f32.gmra.mrb[10].mxu1 %vm256_vm3, %v237_v2 }
 0x105   :  { %381 = vmatprep.mubr.f32.mxu1 %v3071_v23 }
 0x108   :  { %2271 = vmatmul.mubr.msk.f32.gmra.mrb[12].mxu1 %vm256_vm3, %v238_v3 }
 0x109   :  { %387 = vmatprep.mubr.f32.mxu1 %v3071_v23 }
 0x10c   :  { %2272 = vmatmul.mubr.msk.f32.gmra.mrb[14].mxu1 %vm256_vm3, %v239_v5 }
 0x10d   :  { %2436 = vmatprep.mubr.msk.f32.mxu1 %vm256_vm3, %v232_v46 }
 0x110   :  { %2437 = vmatmul.mubr.msk.f32.vlgmr.msra.gmra.mrb[16].mxu1 %vm256_vm3, %v233_v53 }
 0x111   :  { %2619 = vmatpush1.bf16.msra.mxu1 %v3210_v10  ;;  %2439 = vmatprep.mubr.msk.f32.mxu1 %vm256_vm3, %v234_v57 }
 0x112   :  { %2621 = vmatprep.subr.bf16.mxu1 %v3212_v11 }
 0x114   :  { %2440 = vmatmul.mubr.msk.f32.gmra.mrb[18].mxu1 %vm256_vm3, %v235_v62 }
 0x115   :  { %2623 = vmatpush1.bf16.msra.mxu1 %v3217_v16  ;;  %2442 = vmatprep.mubr.msk.f32.mxu1 %vm256_vm3, %v236_v63 }
 0x116   :  { %2625 = vmatprep.subr.bf16.mxu1 %v3220_v17 }
 0x118   :  { %2443 = vmatmul.mubr.msk.f32.gmra.mrb[20].mxu1 %vm256_vm3, %v237_v2 }
 0x119   :  { %2627 = vmatpush1.bf16.msra.mxu1 %v3225_v22  ;;  %2445 = vmatprep.mubr.msk.f32.mxu1 %vm256_vm3, %v238_v3 }
 0x11a   :  { %2629 = vmatprep.subr.bf16.mxu1 %v3228_v24 }
 0x11c   :  { %2446 = vmatmul.mubr.msk.f32.gmra.mrb[22].mxu1 %vm256_vm3, %v239_v5 }
 0x11d   :  { %2631 = vmatpush1.bf16.msra.mxu1 %v3233_v27  ;;  %592 = vmatprep.mubr.f32.mxu1 %v3071_v23 }
 0x11e   :  { %2645 = vmatprep.subr.bf16.mxu1 %v3193_v55 }
 0x120   :  { %2281 = vmatmul.mubr.msk.f32.vlgmr.msra.gmra.mrb[0].mxu1 %vm524_vm2, %v3177_v38 }
 0x121   :  { %2647 = vmatpush1.bf16.msra.mxu1 %v3210_v10  ;;  %765 = vmatprep.mubr.f32.mxu1 %v3071_v23 }
 0x122   :  { %2649 = vmatprep.subr.bf16.mxu1 %v3212_v11 }
 0x125   :  { %2651 = vmatpush1.bf16.msra.mxu1 %v3217_v16 }
 0x126   :  { %2653 = vmatprep.subr.bf16.mxu1 %v3220_v17 }
 0x129   :  { %2655 = vmatpush1.bf16.msra.mxu1 %v3225_v22 }
 0x12a   :  { %2657 = vmatprep.subr.bf16.mxu1 %v3228_v24 }
 0x12d   :  { %2659 = vmatpush1.bf16.msra.mxu1 %v3233_v27 }
 0x12e   :  { %2673 = vmatprep.subr.bf16.mxu1 %v3193_v55 }
 0x1e3   :  { %v2438_v41 = vpop.f32.mrb[16].mxu1 }
 0x1e4   :  { %v3254_v42 = vadd.f32 %v2438_v41, %v252_v40  ;;  %v460_v43 = vpop.f32.mrb[17].mxu1 }
 0x1e5   :  { %v461_v12 = vadd.f32 %v460_v43, %v252_v40 }
 0x1e7   :  { %v2441_v44 = vpop.f32.mrb[18].mxu1 }
 0x1e8   :  { %v3256_v45 = vadd.f32 %v2441_v44, %v252_v40  ;;  %v470_v46 = vpop.f32.mrb[19].mxu1 }
 0x1e9   :  { %v3258_v47 = vadd.f32 %v470_v46, %v252_v40 }
 0x1eb   :  { %v2444_v48 = vpop.f32.mrb[20].mxu1 }
 0x1ec   :  { %v3260_v49 = vadd.f32 %v2444_v48, %v252_v40  ;;  %v480_v50 = vpop.f32.mrb[21].mxu1 }
 0x1ed   :  { %v3263_v52 = vadd.f32 %v480_v50, %v252_v40 }
 0x1ef   :  { %v2447_v53 = vpop.f32.mrb[22].mxu1 }
 0x1f0   :  { %v3266_v56 = vadd.f32 %v2447_v53, %v252_v40  ;;  %v490_v57 = vpop.f32.mrb[23].mxu1 }
 0x1f1   :  { %v3272_v59 = vadd.f32 %v490_v57, %v252_v40 }
 0x1f3   :  { %v594_v60 = vpop.f32.mrb[0].mxu1 }
 0x1f4   :  { %v2856_v62 = vadd.f32 %v594_v60, %v3270_v58  ;;  %v596_v63 = vpop.f32.mrb[1].mxu1 }
 0x1f5   :  { %v2857_v1 = vadd.f32 %v596_v63, %v3276_v61 }
 0x1f6   :  { %v2283_v0 = vmul.f32 -1.442695, %v2856_v62 }
 0x1f7   :  { %v2284_v2 = vmul.f32 -1.442695, %v2857_v1 }
 0x1f8   :  { %2900 = vpow2.f32 %v2283_v0 }
 0x1f9   :  { %2902 = vpow2.f32 %v2284_v2 }
 0x202   :  { %v2901_v3 = vpop.eup %2900 }
 0x203   :  { %v679_v4 = vadd.f32 1.0, %v2901_v3  ;;  %v2903_v5 = vpop.eup %2902 }
 0x204   :  { %v686_v7 = vadd.f32 1.0, %v2903_v5 }
 0x205   :  { %2904 = vrcp.f32 %v679_v4 }
 0x206   :  { %2906 = vrcp.f32 %v686_v7 }
 0x20f   :  { %v2905_v9 = vpop.eup %2904 }
 0x210   :  { %v690_v13 = vmul.f32 %v2905_v9, %v689_v8  ;;  %v2907_v15 = vpop.eup %2906 }
 0x211   :  { %v693_v18 = vsub.f32 1.0, %v2907_v15  ;;  %v695_v21 = vmul.f32 %v2907_v15, %v3177_v38 }
 0x212   :  { %v691_v14 = vadd.f32 %v690_v13, %v461_v12 }
 0x214   :  { %2908 = vtanh.f32 %v691_v14 }
 0x21e   :  { %v2909_v19 = vpop.eup %2908 }
 0x21f   :  { %v694_v20 = vmul.f32 %v2909_v19, %v693_v18 }
 0x221   :  { %v696_v25 = vadd.f32 %v695_v21, %v694_v20 }
 0x223   :  { %697 = vst.msk [vmem:[#allocation7] sm:$0xff] %vm524_vm2, %v696_v25  ;;  %2285 = vmatmul.mubr.msk.f32.vlgmr.msra.gmra.mrb[2].mxu1 %vm524_vm2, %v696_v25  ;;  %2484 = vmatmul.mubr.msk.f32.vlgmr.msra.gmra.mrb[10].mxu0 %vm524_vm2, %v696_v25 }
 0x224   :  { %2675 = vmatpush1.bf16.msra.mxu1 %v3210_v10  ;;  %2690 = vmatpush3.bf16.msra.mxu0 %v3156_v29 }
 0x225   :  { %2677 = vmatprep.subr.bf16.mxu1 %v3212_v11  ;;  %2691 = vmatprep.subr.bf16.mxu0 %v3072_v28 }
 0x226   :  { %939 = vmatprep.mubr.f32.mxu1 %v3071_v23  ;;  %2502 = vmatprep.mubr.msk.f32.mxu0 %vm3073_vm1, %v3071_v23 }
 0x228   :  { %2679 = vmatpush1.bf16.msra.mxu1 %v3217_v16  ;;  %2693 = vmatpush3.bf16.msra.mxu0 %v3161_v31 }
 0x229   :  { %2681 = vmatprep.subr.bf16.mxu1 %v3220_v17  ;;  %2694 = vmatprep.subr.bf16.mxu0 %v3072_v28 }
 0x22c   :  { %2683 = vmatpush1.bf16.msra.mxu1 %v3225_v22  ;;  %2696 = vmatpush3.bf16.msra.mxu0 %v3165_v34 }
 0x22d   :  { %2685 = vmatprep.subr.bf16.mxu1 %v3228_v24  ;;  %2697 = vmatprep.subr.bf16.mxu0 %v3072_v28 }
 0x230   :  { %2687 = vmatpush1.bf16.msra.mxu1 %v3233_v27  ;;  %2699 = vmatpush3.bf16.msra.mxu0 %v3169_v37 }
 0x231   :  { %2701 = vmatprep.subr.bf16.mxu1 %v3193_v55  ;;  %2716 = vmatprep.subr.bf16.mxu0 %v3072_v28 }
 0x2f6   :  { %v767_v38 = vpop.f32.mrb[2].mxu1  ;;  %v838_v26 = vpop.f32.mrb[10].mxu0 }
 0x2f7   :  { %v2858_v30 = vadd.f32 %v767_v38, %v3270_v58  ;;  %v769_v32 = vpop.f32.mrb[3].mxu1  ;;  %v2485_v33 = vpop.f32.mrb[11].mxu0  ;;  %v862_v48 = vadd.f32 %v838_v26, %v3280_v6 }
 0x2f8   :  { %v2859_v39 = vadd.f32 %v769_v32, %v3276_v61 }
 0x2f9   :  { %v2287_v36 = vmul.f32 -1.442695, %v2858_v30 }
 0x2fa   :  { %v2288_v40 = vmul.f32 -1.442695, %v2859_v39 }
 0x2fb   :  { %2910 = vpow2.f32 %v2287_v36 }
 0x2fc   :  { %2912 = vpow2.f32 %v2288_v40 }
 0x305   :  { %v2911_v41 = vpop.eup %2910 }
 0x306   :  { %v852_v43 = vadd.f32 1.0, %v2911_v41  ;;  %v2913_v44 = vpop.eup %2912 }
 0x307   :  { %v859_v46 = vadd.f32 1.0, %v2913_v44 }
 0x308   :  { %2914 = vrcp.f32 %v852_v43 }
 0x309   :  { %2916 = vrcp.f32 %v859_v46 }
 0x312   :  { %v2915_v50 = vpop.eup %2914 }
 0x313   :  { %v863_v53 = vmul.f32 %v2915_v50, %v862_v48  ;;  %v2917_v60 = vpop.eup %2916 }
 0x314   :  { %v866_v62 = vsub.f32 1.0, %v2917_v60  ;;  %v868_v1 = vmul.f32 %v2917_v60, %v696_v25 }
 0x315   :  { %v864_v57 = vadd.f32 %v863_v53, %v3254_v42 }
 0x317   :  { %2918 = vtanh.f32 %v864_v57 }
 0x321   :  { %v2919_v63 = vpop.eup %2918 }
 0x322   :  { %v867_v0 = vmul.f32 %v2919_v63, %v866_v62 }
 0x324   :  { %v869_v2 = vadd.f32 %v868_v1, %v867_v0 }
 0x326   :  { %871 = vst.msk [vmem:[#allocation7 + $0x8] sm:$0xff] %vm524_vm2, %v869_v2  ;;  %2289 = vmatmul.mubr.msk.f32.vlgmr.msra.gmra.mrb[4].mxu1 %vm524_vm2, %v869_v2  ;;  %2503 = vmatmul.mubr.msk.f32.vlgmr.msra.gmra.mrb[12].mxu0 %vm524_vm2, %v869_v2 }
 0x327   :  { %2703 = vmatpush1.bf16.msra.mxu1 %v3210_v10  ;;  %2718 = vmatpush3.bf16.msra.mxu0 %v3156_v29 }
 0x328   :  { %2705 = vmatprep.subr.bf16.mxu1 %v3212_v11  ;;  %2719 = vmatprep.subr.bf16.mxu0 %v3072_v28 }
 0x329   :  { %1113 = vmatprep.mubr.f32.mxu1 %v3071_v23  ;;  %2521 = vmatprep.mubr.msk.f32.mxu0 %vm3073_vm1, %v3071_v23 }
 0x32b   :  { %2707 = vmatpush1.bf16.msra.mxu1 %v3217_v16  ;;  %2721 = vmatpush3.bf16.msra.mxu0 %v3161_v31 }
 0x32c   :  { %2709 = vmatprep.subr.bf16.mxu1 %v3220_v17  ;;  %2722 = vmatprep.subr.bf16.mxu0 %v3072_v28 }
 0x32f   :  { %2711 = vmatpush1.bf16.msra.mxu1 %v3225_v22  ;;  %2724 = vmatpush3.bf16.msra.mxu0 %v3165_v34 }
 0x330   :  { %2713 = vmatprep.subr.bf16.mxu1 %v3228_v24  ;;  %2725 = vmatprep.subr.bf16.mxu0 %v3072_v28 }
 0x333   :  { %2715 = vmatpush1.bf16.msra.mxu1 %v3233_v27  ;;  %2727 = vmatpush3.bf16.msra.mxu0 %v3169_v37 }
 0x334   :  { %2729 = vmatprep.subr.bf16.mxu1 %v3193_v55  ;;  %2744 = vmatprep.subr.bf16.mxu0 %v3072_v28 }
 0x3f9   :  { %v941_v42 = vpop.f32.mrb[4].mxu1  ;;  %v1012_v3 = vpop.f32.mrb[12].mxu0 }
 0x3fa   :  { %v2860_v4 = vadd.f32 %v941_v42, %v3270_v58  ;;  %v943_v5 = vpop.f32.mrb[5].mxu1  ;;  %v2504_v7 = vpop.f32.mrb[13].mxu0  ;;  %v1036_v19 = vadd.f32 %v1012_v3, %v3280_v6 }
 0x3fb   :  { %v2861_v9 = vadd.f32 %v943_v5, %v3276_v61 }
 0x3fc   :  { %v2291_v8 = vmul.f32 -1.442695, %v2860_v4 }
 0x3fd   :  { %v2292_v12 = vmul.f32 -1.442695, %v2861_v9 }
 0x3fe   :  { %2920 = vpow2.f32 %v2291_v8 }
 0x3ff   :  { %2922 = vpow2.f32 %v2292_v12 }
 0x408   :  { %v2921_v13 = vpop.eup %2920 }
 0x409   :  { %v1026_v14 = vadd.f32 1.0, %v2921_v13  ;;  %v2923_v15 = vpop.eup %2922 }
 0x40a   :  { %v1033_v18 = vadd.f32 1.0, %v2923_v15 }
 0x40b   :  { %2924 = vrcp.f32 %v1026_v14 }
 0x40c   :  { %2926 = vrcp.f32 %v1033_v18 }
 0x415   :  { %v2925_v20 = vpop.eup %2924 }
 0x416   :  { %v1037_v21 = vmul.f32 %v2925_v20, %v1036_v19  ;;  %v2927_v38 = vpop.eup %2926 }
 0x417   :  { %v1040_v26 = vsub.f32 1.0, %v2927_v38  ;;  %v1042_v33 = vmul.f32 %v2927_v38, %v869_v2 }
 0x418   :  { %v1038_v25 = vadd.f32 %v1037_v21, %v3258_v47 }
 0x41a   :  { %2928 = vtanh.f32 %v1038_v25 }
 0x424   :  { %v2929_v30 = vpop.eup %2928 }
 0x425   :  { %v1041_v32 = vmul.f32 %v2929_v30, %v1040_v26 }
 0x427   :  { %v1043_v36 = vadd.f32 %v1042_v33, %v1041_v32 }
 0x429   :  { %1045 = vst.msk [vmem:[#allocation7 + $0x10] sm:$0xff] %vm524_vm2, %v1043_v36  ;;  %2293 = vmatmul.mubr.msk.f32.vlgmr.msra.gmra.mrb[6].mxu1 %vm524_vm2, %v1043_v36  ;;  %2522 = vmatmul.mubr.msk.f32.vlgmr.msra.gmra.mrb[14].mxu0 %vm524_vm2, %v1043_v36 }
 0x42a   :  { %2731 = vmatpush1.bf16.msra.mxu1 %v3210_v10  ;;  %2746 = vmatpush3.bf16.msra.mxu0 %v3156_v29 }
 0x42b   :  { %2733 = vmatprep.subr.bf16.mxu1 %v3212_v11  ;;  %2747 = vmatprep.subr.bf16.mxu0 %v3072_v28 }
 0x42c   :  { %1287 = vmatprep.mubr.f32.mxu1 %v3071_v23  ;;  %2540 = vmatprep.mubr.msk.f32.mxu0 %vm3073_vm1, %v3071_v23 }
 0x42e   :  { %2735 = vmatpush1.bf16.msra.mxu1 %v3217_v16  ;;  %2749 = vmatpush3.bf16.msra.mxu0 %v3161_v31 }
 0x42f   :  { %2737 = vmatprep.subr.bf16.mxu1 %v3220_v17  ;;  %2750 = vmatprep.subr.bf16.mxu0 %v3072_v28 }
 0x432   :  { %2739 = vmatpush1.bf16.msra.mxu1 %v3225_v22  ;;  %2752 = vmatpush3.bf16.msra.mxu0 %v3165_v34 }
 0x433   :  { %2741 = vmatprep.subr.bf16.mxu1 %v3228_v24  ;;  %2753 = vmatprep.subr.bf16.mxu0 %v3072_v28 }
 0x436   :  { %2743 = vmatpush1.bf16.msra.mxu1 %v3233_v27  ;;  %2755 = vmatpush3.bf16.msra.mxu0 %v3169_v37 }
 0x437   :  { %2757 = vmatprep.subr.bf16.mxu1 %v3193_v55  ;;  %2772 = vmatprep.subr.bf16.mxu0 %v3072_v28 }
 0x4fc   :  { %v1115_v47 = vpop.f32.mrb[6].mxu1  ;;  %v1186_v39 = vpop.f32.mrb[14].mxu0 }
 0x4fd   :  { %v2862_v40 = vadd.f32 %v1115_v47, %v3270_v58  ;;  %v1117_v41 = vpop.f32.mrb[7].mxu1  ;;  %v2523_v43 = vpop.f32.mrb[15].mxu0  ;;  %v1210_v62 = vadd.f32 %v1186_v39, %v3280_v6 }
 0x4fe   :  { %v2863_v46 = vadd.f32 %v1117_v41, %v3276_v61 }
 0x4ff   :  { %v2295_v44 = vmul.f32 -1.442695, %v2862_v40 }
 0x500   :  { %v2296_v48 = vmul.f32 -1.442695, %v2863_v46 }
 0x501   :  { %2930 = vpow2.f32 %v2295_v44 }
 0x502   :  { %2932 = vpow2.f32 %v2296_v48 }
 0x50b   :  { %v2931_v50 = vpop.eup %2930 }
 0x50c   :  { %v1200_v53 = vadd.f32 1.0, %v2931_v50  ;;  %v2933_v57 = vpop.eup %2932 }
 0x50d   :  { %v1207_v60 = vadd.f32 1.0, %v2933_v57 }
 0x50e   :  { %2934 = vrcp.f32 %v1200_v53 }
 0x50f   :  { %2936 = vrcp.f32 %v1207_v60 }
 0x518   :  { %v2935_v63 = vpop.eup %2934 }
 0x519   :  { %v1211_v0 = vmul.f32 %v2935_v63, %v1210_v62  ;;  %v2937_v2 = vpop.eup %2936 }
 0x51a   :  { %v1214_v42 = vsub.f32 1.0, %v2937_v2  ;;  %v1216_v5 = vmul.f32 %v2937_v2, %v1043_v36 }
 0x51b   :  { %v1212_v1 = vadd.f32 %v1211_v0, %v3256_v45 }
 0x51d   :  { %2938 = vtanh.f32 %v1212_v1 }
 0x527   :  { %v2939_v3 = vpop.eup %2938 }
 0x528   :  { %v1215_v4 = vmul.f32 %v2939_v3, %v1214_v42 }
 0x52a   :  { %v1217_v7 = vadd.f32 %v1216_v5, %v1215_v4 }
 0x52c   :  { %1219 = vst.msk [vmem:[#allocation7 + $0x18] sm:$0xff] %vm524_vm2, %v1217_v7  ;;  %2297 = vmatmul.mubr.msk.f32.vlgmr.msra.gmra.mrb[8].mxu1 %vm524_vm2, %v1217_v7  ;;  %2541 = vmatmul.mubr.msk.f32.vlgmr.msra.gmra.mrb[16].mxu0 %vm524_vm2, %v1217_v7 }
 0x52d   :  { %2759 = vmatpush1.bf16.msra.mxu1 %v3210_v10  ;;  %2774 = vmatpush3.bf16.msra.mxu0 %v3156_v29 }
 0x52e   :  { %2761 = vmatprep.subr.bf16.mxu1 %v3212_v11  ;;  %2775 = vmatprep.subr.bf16.mxu0 %v3072_v28 }
 0x52f   :  { %1461 = vmatprep.mubr.f32.mxu1 %v3071_v23  ;;  %2559 = vmatprep.mubr.msk.f32.mxu0 %vm3073_vm1, %v3071_v23 }
 0x531   :  { %2763 = vmatpush1.bf16.msra.mxu1 %v3217_v16  ;;  %2777 = vmatpush3.bf16.msra.mxu0 %v3161_v31 }
 0x532   :  { %2765 = vmatprep.subr.bf16.mxu1 %v3220_v17  ;;  %2778 = vmatprep.subr.bf16.mxu0 %v3072_v28 }
 0x535   :  { %2767 = vmatpush1.bf16.msra.mxu1 %v3225_v22  ;;  %2780 = vmatpush3.bf16.msra.mxu0 %v3165_v34 }
 0x536   :  { %2769 = vmatprep.subr.bf16.mxu1 %v3228_v24  ;;  %2781 = vmatprep.subr.bf16.mxu0 %v3072_v28 }
 0x539   :  { %2771 = vmatpush1.bf16.msra.mxu1 %v3233_v27  ;;  %2783 = vmatpush3.bf16.msra.mxu0 %v3169_v37 }
 0x53a   :  { %2785 = vmatprep.subr.bf16.mxu1 %v3193_v55  ;;  %2800 = vmatprep.subr.bf16.mxu0 %v3072_v28 }
 0x5ff   :  { %v1289_v45 = vpop.f32.mrb[8].mxu1  ;;  %v1360_v8 = vpop.f32.mrb[16].mxu0 }
 0x600   :  { %v2864_v9 = vadd.f32 %v1289_v45, %v3270_v58  ;;  %v1291_v12 = vpop.f32.mrb[9].mxu1  ;;  %v2542_v13 = vpop.f32.mrb[17].mxu0  ;;  %v1384_v38 = vadd.f32 %v1360_v8, %v3280_v6 }
 0x601   :  { %v2865_v15 = vadd.f32 %v1291_v12, %v3276_v61 }
 0x602   :  { %v2299_v14 = vmul.f32 -1.442695, %v2864_v9 }
 0x603   :  { %v2300_v18 = vmul.f32 -1.442695, %v2865_v15 }
 0x604   :  { %2940 = vpow2.f32 %v2299_v14 }
 0x605   :  { %2942 = vpow2.f32 %v2300_v18 }
 0x60e   :  { %v2941_v19 = vpop.eup %2940 }
 0x60f   :  { %v1374_v20 = vadd.f32 1.0, %v2941_v19  ;;  %v2943_v21 = vpop.eup %2942 }
 0x610   :  { %v1381_v25 = vadd.f32 1.0, %v2943_v21  ;;  %v76_v21 = vld [vmem:[#allocation3 + $0x150] sm:$0xff] }
 0x611   :  { %2944 = vrcp.f32 %v1374_v20 }
 0x612   :  { %2946 = vrcp.f32 %v1381_v25  ;;  %v78_v25 = vld [vmem:[#allocation3 + $0x168] sm:$0xff] }
 0x61b   :  { %v2945_v26 = vpop.eup %2944 }
 0x61c   :  { %v1385_v30 = vmul.f32 %v2945_v26, %v1384_v38  ;;  %v2947_v33 = vpop.eup %2946  ;;  %v81_v26 = vld [vmem:[#allocation3 + $0x188] sm:$0xff] }
 0x61d   :  { %v1388_v36 = vsub.f32 1.0, %v2947_v33  ;;  %v1390_v40 = vmul.f32 %v2947_v33, %v1217_v7 }
 0x61e   :  { %v1386_v32 = vadd.f32 %v1385_v30, %v3263_v52  ;;  %v83_v30 = vld [vmem:[#allocation3 + $0x1a0] sm:$0xff] }
 0x620   :  { %2948 = vtanh.f32 %v1386_v32 }
 0x62a   :  { %v2949_v47 = vpop.eup %2948 }
 0x62b   :  { %v1389_v39 = vmul.f32 %v2949_v47, %v1388_v36  ;;  %v2842_v36 = vpack.c.bf16 %v78_v25, %v76_v21 }
 0x62d   :  { %v1391_v41 = vadd.f32 %v1390_v40, %v1389_v39  ;;  %v2844_v39 = vpack.c.bf16 %v83_v30, %v81_v26  ;;  %v80_v40 = vld [vmem:[#allocation3 + $0x180] sm:$0xff] }
 0x62f   :  { %1393 = vst.msk [vmem:[#allocation7 + $0x20] sm:$0xff] %vm524_vm2, %v1391_v41  ;;  %2301 = vmatmul.mubr.msk.f32.vlgmr.msra.gmra.mrb[10].mxu1 %vm524_vm2, %v1391_v41  ;;  %2560 = vmatmul.mubr.msk.f32.vlgmr.msra.gmra.mrb[18].mxu0 %vm524_vm2, %v1391_v41 }
 0x630   :  { %2787 = vmatpush1.bf16.msra.mxu1 %v3210_v10  ;;  %2802 = vmatpush3.bf16.msra.mxu0 %v3156_v29 }
 0x631   :  { %2789 = vmatprep.subr.bf16.mxu1 %v3212_v11  ;;  %2803 = vmatprep.subr.bf16.mxu0 %v3072_v28 }
 0x632   :  { %1635 = vmatprep.mubr.f32.mxu1 %v3071_v23  ;;  %2578 = vmatprep.mubr.msk.f32.mxu0 %vm3073_vm1, %v3071_v23 }
 0x634   :  { %2791 = vmatpush1.bf16.msra.mxu1 %v3217_v16  ;;  %2805 = vmatpush3.bf16.msra.mxu0 %v3161_v31 }
 0x635   :  { %2793 = vmatprep.subr.bf16.mxu1 %v3220_v17  ;;  %2806 = vmatprep.subr.bf16.mxu0 %v3072_v28 }
 0x638   :  { %2795 = vmatpush1.bf16.msra.mxu1 %v3225_v22  ;;  %2808 = vmatpush3.bf16.msra.mxu0 %v3165_v34 }
 0x639   :  { %2797 = vmatprep.subr.bf16.mxu1 %v3228_v24  ;;  %2809 = vmatprep.subr.bf16.mxu0 %v3072_v28 }
 0x63c   :  { %2799 = vmatpush1.bf16.msra.mxu1 %v3233_v27  ;;  %2811 = vmatpush3.bf16.msra.mxu0 %v3169_v37 }
 0x63d   :  { %2828 = vmatprep.subr.bf16.mxu0 %v3072_v28  ;;  %2813 = vmatprep.subr.bf16.mxu1 %v3193_v55 }
 0x702   :  { %v1463_v52 = vpop.f32.mrb[10].mxu1  ;;  %v1534_v43 = vpop.f32.mrb[18].mxu0 }
 0x703   :  { %v2866_v44 = vadd.f32 %v1463_v52, %v3270_v58  ;;  %v1465_v46 = vpop.f32.mrb[11].mxu1  ;;  %v2561_v48 = vpop.f32.mrb[19].mxu0  ;;  %v1558_v1 = vadd.f32 %v1534_v43, %v3280_v6  ;;  %v85_v52 = vld [vmem:[#allocation3 + $0x1b8] sm:$0xff]  ;;  %v87_v43 = vld [vmem:[#allocation3 + $0x1d0] sm:$0xff] }
 0x704   :  { %v2867_v53 = vadd.f32 %v1465_v46, %v3276_v61  ;;  %v84_v46 = vld [vmem:[#allocation3 + $0x1b0] sm:$0xff]  ;;  %v86_v48 = vld [vmem:[#allocation3 + $0x1c8] sm:$0xff] }
 0x705   :  { %v2303_v50 = vmul.f32 -1.442695, %v2866_v44  ;;  %v2848_v44 = vpack.c.bf16 %v87_v43, %v85_v52 }
 0x706   :  { %v2304_v57 = vmul.f32 -1.442695, %v2867_v53  ;;  %v91_v53 = vld [vmem:[#allocation3 + $0x200] sm:$0xff] }
 0x707   :  { %2950 = vpow2.f32 %v2303_v50  ;;  %v89_v50 = vld [vmem:[#allocation3 + $0x1e8] sm:$0xff] }
 0x708   :  { %2952 = vpow2.f32 %v2304_v57  ;;  %v2850_v57 = vpack.c.bf16 %v86_v48, %v84_v46  ;;  %v2073_v48 = vld [vmem:[%s3596_s2 + $0x8] sm:$0xff] }
 0x711   :  { %v2951_v60 = vpop.eup %2950 }
 0x712   :  { %v1548_v62 = vadd.f32 1.0, %v2951_v60  ;;  %v2953_v63 = vpop.eup %2952  ;;  %v2852_v60 = vpack.c.bf16 %v91_v53, %v89_v50 }
 0x713   :  { %v1555_v0 = vadd.f32 1.0, %v2953_v63  ;;  %v90_v63 = vld [vmem:[#allocation3 + $0x1f8] sm:$0xff] }
 0x714   :  { %2954 = vrcp.f32 %v1548_v62  ;;  %v88_v62 = vld [vmem:[#allocation3 + $0x1e0] sm:$0xff] }
 0x715   :  { %2956 = vrcp.f32 %v1555_v0  ;;  %v2854_v0 = vpack.c.bf16 %v90_v63, %v88_v62 }
 0x71e   :  { %v2955_v55 = vpop.eup %2954 }
 0x71f   :  { %v1559_v2 = vmul.f32 %v2955_v55, %v1558_v1  ;;  %v2957_v3 = vpop.eup %2956  ;;  %v1916_v1 = vld [vmem:[#allocation7] sm:$0xff]  ;;  %v1917_v55 = vld [vmem:[#allocation7 + $0x8] sm:$0xff] }
 0x720   :  { %v1562_v4 = vsub.f32 1.0, %v2957_v3  ;;  %v1564_v45 = vmul.f32 %v2957_v3, %v1391_v41  ;;  %v82_v41 = vld [vmem:[#allocation3 + $0x198] sm:$0xff]  ;;  %v1920_v3 = vld [vmem:[#allocation7 + $0x20] sm:$0xff] }
 0x721   :  { %v1560_v42 = vadd.f32 %v1559_v2, %v3260_v49  ;;  %v1918_v2 = vld [vmem:[#allocation7 + $0x10] sm:$0xff] }
 0x723   :  { %2958 = vtanh.f32 %v1560_v42  ;;  %v1919_v42 = vld [vmem:[#allocation7 + $0x18] sm:$0xff] }
 0x72d   :  { %v2959_v5 = vpop.eup %2958 }
 0x72e   :  { %v1563_v7 = vmul.f32 %v2959_v5, %v1562_v4 }
 0x730   :  { %v1565_v8 = vadd.f32 %v1564_v45, %v1563_v7 }
 0x732   :  { %1567 = vst.msk [vmem:[#allocation7 + $0x28] sm:$0xff] %vm524_vm2, %v1565_v8  ;;  %2305 = vmatmul.mubr.msk.f32.vlgmr.msra.gmra.mrb[12].mxu1 %vm524_vm2, %v1565_v8  ;;  %2579 = vmatmul.mubr.msk.f32.vlgmr.msra.gmra.mrb[20].mxu0 %vm524_vm2, %v1565_v8 }
 0x733   :  { %2830 = vmatpush3.bf16.msra.mxu0 %v3156_v29  ;;  %2815 = vmatpush1.bf16.msra.mxu1 %v3210_v10  ;;  %v77_v29 = vld [vmem:[#allocation3 + $0x158] sm:$0xff] }
 0x734   :  { %2831 = vmatprep.subr.bf16.mxu0 %v3072_v28  ;;  %2817 = vmatprep.subr.bf16.mxu1 %v3212_v11 }
 0x735   :  { %1809 = vmatprep.mubr.f32.mxu1 %v3071_v23  ;;  %2597 = vmatprep.mubr.msk.f32.mxu0 %vm3073_vm1, %v3071_v23 }
 0x737   :  { %2833 = vmatpush3.bf16.msra.mxu0 %v3161_v31  ;;  %2819 = vmatpush1.bf16.msra.mxu1 %v3217_v16  ;;  %v79_v31 = vld [vmem:[#allocation3 + $0x170] sm:$0xff] }
 0x738   :  { %2834 = vmatprep.subr.bf16.mxu0 %v3072_v28  ;;  %2821 = vmatprep.subr.bf16.mxu1 %v3220_v17  ;;  %v2840_v10 = vpack.c.bf16 %v79_v31, %v77_v29 }
 0x739   :  { %v1921_v4 = vld [vmem:[#allocation7 + $0x28] sm:$0xff] }
 0x73b   :  { %2836 = vmatpush3.bf16.msra.mxu0 %v3165_v34  ;;  %2823 = vmatpush1.bf16.msra.mxu1 %v3225_v22 }
 0x73c   :  { %2837 = vmatprep.subr.bf16.mxu0 %v3072_v28  ;;  %2825 = vmatprep.subr.bf16.mxu1 %v3228_v24 }
 0x73f   :  { %2839 = vmatpush3.bf16.msra.mxu0 %v3169_v37  ;;  %2827 = vmatpush1.bf16.msra.mxu1 %v3233_v27 }
 0x740   :  { %2841 = vmatprep.subr.bf16.mxu0 %v2840_v10 }
 0x805   :  { %v1637_v11 = vpop.f32.mrb[12].mxu1  ;;  %v1708_v16 = vpop.f32.mrb[20].mxu0 }
 0x806   :  { %v2868_v17 = vadd.f32 %v1637_v11, %v3270_v58  ;;  %v1639_v49 = vpop.f32.mrb[13].mxu1  ;;  %v2580_v34 = vpop.f32.mrb[21].mxu0  ;;  %v1732_v13 = vadd.f32 %v1708_v16, %v3280_v6 }
 0x807   :  { %v2869_v22 = vadd.f32 %v1639_v49, %v3276_v61 }
 0x808   :  { %v2307_v9 = vmul.f32 -1.442695, %v2868_v17  ;;  %v93_v17 = vld [vmem:[#allocation3 + $0x123] ss:$8 sm:$0x3] }
 0x809   :  { %v2308_v28 = vmul.f32 -1.442695, %v2869_v22  ;;  %v3465_v49 = vrot.slane %v93_v17, %v247_v54 }
 0x80a   :  { %2960 = vpow2.f32 %v2307_v9 }
 0x80b   :  { %2962 = vpow2.f32 %v2308_v28 }
 0x814   :  { %v2961_v24 = vpop.eup %2960 }
 0x815   :  { %v1722_v37 = vadd.f32 1.0, %v2961_v24  ;;  %v2963_v27 = vpop.eup %2962 }
 0x816   :  { %v1729_v12 = vadd.f32 1.0, %v2963_v27 }
 0x817   :  { %2964 = vrcp.f32 %v1722_v37 }
 0x818   :  { %2966 = vrcp.f32 %v1729_v12 }
 0x821   :  { %v2965_v14 = vpop.eup %2964 }
 0x822   :  { %v1733_v15 = vmul.f32 %v2965_v14, %v1732_v13  ;;  %v2967_v19 = vpop.eup %2966 }
 0x823   :  { %v1736_v20 = vsub.f32 1.0, %v2967_v19  ;;  %v1738_v33 = vmul.f32 %v2967_v19, %v1565_v8 }
 0x824   :  { %v1734_v18 = vadd.f32 %v1733_v15, %v3272_v59  ;;  %v2846_v59 = vpack.c.bf16 %v82_v41, %v80_v40  ;;  %v2072_v41 = vld [vmem:[%s3596_s2] sm:$0xff] }
 0x826   :  { %2968 = vtanh.f32 %v1734_v18 }
 0x830   :  { %v2969_v38 = vpop.eup %2968 }
 0x831   :  { %v1737_v32 = vmul.f32 %v2969_v38, %v1736_v20 }
 0x833   :  { %v3438_v47 = vadd.f32 %v1738_v33, %v1737_v32 }
 0x835   :  { %1741 = vst.msk [vmem:[#allocation7 + $0x30] sm:$0xff] %vm524_vm2, %v3438_v47  ;;  %2309 = vmatmul.mubr.msk.f32.vlgmr.msra.gmra.mrb[14].mxu1 %vm524_vm2, %v3438_v47  ;;  %2598 = vmatmul.mubr.msk.f32.vlgmr.msra.gmra.mrb[22].mxu0 %vm524_vm2, %v3438_v47 }
 0x836   :  { %2843 = vmatpush1.bf16.msra.mxu0 %v2842_v36  ;;  %2023 = vmatprep.mubr.f32.mxu0 %v3071_v23 }
 0x837   :  { %2845 = vmatprep.subr.bf16.mxu0 %v2844_v39  ;;  %v3478_v39 = vrot.slane %v93_v17, %v243_v51 }
 0x83a   :  { %2847 = vmatpush1.bf16.msra.mxu0 %v2846_v59 }
 0x83b   :  { %2849 = vmatprep.subr.bf16.mxu0 %v2848_v44 }
 0x83c   :  { %v1922_v5 = vld [vmem:[#allocation7 + $0x30] sm:$0xff] }
 0x83e   :  { %2851 = vmatpush1.bf16.msra.mxu0 %v2850_v57 }
 0x83f   :  { %2853 = vmatprep.subr.bf16.mxu0 %v2852_v60 }
 0x842   :  { %2855 = vmatpush1.bf16.msra.mxu0 %v2854_v0 }
 0x845   :  { %2313 = vmatmul.mubr.msk.f32.vlgmr.msra.gmra.mrb[24].mxu0 %vm524_vm2, %v1916_v1 }
 0x846   :  { %2029 = vmatprep.mubr.f32.mxu0 %v3071_v23 }
 0x849   :  { %2314 = vmatmul.mubr.msk.f32.gmra.mrb[26].mxu0 %vm524_vm2, %v1917_v55 }
 0x84a   :  { %2035 = vmatprep.mubr.f32.mxu0 %v3071_v23 }
 0x84d   :  { %2315 = vmatmul.mubr.msk.f32.gmra.mrb[28].mxu0 %vm524_vm2, %v1918_v2 }
 0x84e   :  { %2041 = vmatprep.mubr.f32.mxu0 %v3071_v23 }
 0x851   :  { %2316 = vmatmul.mubr.msk.f32.gmra.mrb[30].mxu0 %vm524_vm2, %v1919_v42  ;;  %v2074_v42 = vld [vmem:[%s3596_s2 + $0x10] sm:$0xff] }
 0x852   :  { %2047 = vmatprep.mubr.f32.mxu0 %v3071_v23 }
 0x855   :  { %2317 = vmatmul.mubr.msk.f32.gmra.mrb[32].mxu0 %vm524_vm2, %v1920_v3 }
 0x856   :  { %2053 = vmatprep.mubr.f32.mxu0 %v3071_v23 }
 0x859   :  { %2318 = vmatmul.mubr.msk.f32.gmra.mrb[34].mxu0 %vm524_vm2, %v1921_v4 }
 0x85a   :  { %2059 = vmatprep.mubr.f32.mxu0 %v3071_v23 }
 0x85d   :  { %2319 = vmatmul.mubr.msk.f32.gmra.mrb[36].mxu0 %vm524_vm2, %v1922_v5 }
 0x85e   :  { %2065 = vmatprep.mubr.f32.mxu0 %v3071_v23 }
 0x908   :  { %v1811_v7 = vpop.f32.mrb[14].mxu1  ;;  %v1882_v45 = vpop.f32.mrb[22].mxu0 }
 0x909   :  { %v2870_v8 = vadd.f32 %v1811_v7, %v3270_v58  ;;  %v1813_v29 = vpop.f32.mrb[15].mxu1  ;;  %v2599_v31 = vpop.f32.mrb[23].mxu0  ;;  %v1906_v20 = vadd.f32 %v1882_v45, %v3280_v6 }
 0x90a   :  { %v2871_v11 = vadd.f32 %v1813_v29, %v3276_v61 }
 0x90b   :  { %v2311_v10 = vmul.f32 -1.442695, %v2870_v8 }
 0x90c   :  { %v2312_v16 = vmul.f32 -1.442695, %v2871_v11 }
 0x90d   :  { %2970 = vpow2.f32 %v2311_v10 }
 0x90e   :  { %2972 = vpow2.f32 %v2312_v16 }
 0x917   :  { %v2971_v34 = vpop.eup %2970 }
 0x918   :  { %v1896_v9 = vadd.f32 1.0, %v2971_v34  ;;  %v2025_v23 = vpop.f32.mrb[24].mxu0  ;;  %v2973_v37 = vpop.eup %2972  ;;  %v2075_v34 = vld [vmem:[%s3596_s2 + $0x18] sm:$0xff] }
 0x919   :  { %v2027_v22 = vpop.f32.mrb[25].mxu0  ;;  %v1903_v14 = vadd.f32 1.0, %v2973_v37 }
 0x91a   :  { %2974 = vrcp.f32 %v1896_v9  ;;  %v2028_v58 = vadd.f32 %v2027_v22, %v3465_v49 }
 0x91c   :  { %v2080_v28 = vmul.f32 0.5, %v2028_v58  ;;  %v2031_v24 = vpop.f32.mrb[26].mxu0  ;;  %2128 = vrot.lane.b32.xlu0 %v2028_v58, %s3074_s1 }
 0x91d   :  { %v2033_v61 = vpop.f32.mrb[27].mxu0  ;;  %v3495_v0 = vadd.f32 %v2031_v24, %v3478_v39 }
 0x91e   :  { %v2088_v27 = vmul.f32 1.442695, %v2080_v28  ;;  %v2034_v12 = vadd.f32 %v2033_v61, %v3465_v49 }
 0x920   :  { %2976 = vpow2.f32 %v2088_v27  ;;  %v2081_v54 = vmul.f32 0.5, %v2034_v12  ;;  %v2037_v13 = vpop.f32.mrb[28].mxu0  ;;  %2130 = vrot.lane.b32.xlu0 %v2034_v12, %s3074_s1 }
 0x921   :  { %v2039_v15 = vpop.f32.mrb[29].mxu0  ;;  %v2038_v31 = vadd.f32 %v2037_v13, %v3478_v39 }
 0x922   :  { %v2090_v18 = vmul.f32 1.442695, %v2081_v54  ;;  %v2040_v19 = vadd.f32 %v2039_v15, %v3465_v49  ;;  %v2077_v54 = vld [vmem:[%s3596_s2 + $0x28] sm:$0xff] }
 0x924   :  { %v2975_v21 = vpop.eup %2974  ;;  %2978 = vpow2.f32 %v2090_v18  ;;  %v2082_v25 = vmul.f32 0.5, %v2040_v19  ;;  %v2043_v38 = vpop.f32.mrb[30].mxu0  ;;  %2132 = vrot.lane.b32.xlu1 %v2040_v19, %s3074_s1 }
 0x925   :  { %v1907_v26 = vmul.f32 %v2975_v21, %v1906_v20  ;;  %2980 = vrcp.f32 %v1903_v14  ;;  %v2045_v30 = vpop.f32.mrb[31].mxu0  ;;  %v2044_v28 = vadd.f32 %v2043_v38, %v3478_v39  ;;  %v2078_v20 = vld [vmem:[%s3596_s2 + $0x30] sm:$0xff] }
 0x926   :  { %v2092_v32 = vmul.f32 1.442695, %v2082_v25  ;;  %v2046_v33 = vadd.f32 %v2045_v30, %v3465_v49 }
 0x927   :  { %v1908_v36 = vadd.f32 %v1907_v26, %v3266_v56  ;;  %v3486_v56 = vadd.f32 %v2025_v23, %v3478_v39 }
 0x928   :  { %2982 = vpow2.f32 %v2092_v32  ;;  %v2083_v6 = vmul.f32 0.5, %v2046_v33  ;;  %v2049_v40 = vpop.f32.mrb[32].mxu0  ;;  %2134 = vrot.lane.b32.xlu1 %v2046_v33, %s3074_s1 }
 0x929   :  { %2984 = vtanh.f32 %v1908_v36  ;;  %v2051_v52 = vpop.f32.mrb[33].mxu0  ;;  %v2050_v27 = vadd.f32 %v2049_v40, %v3478_v39 }
 0x92a   :  { %v2977_v43 = vpop.eup %2976  ;;  %v2094_v59 = vmul.f32 1.442695, %v2083_v6  ;;  %v2052_v44 = vadd.f32 %v2051_v52, %v3465_v49 }
 0x92b   :  { %v2104_v35 = vmul.f32 %v2977_v43, %v2072_v41 }
 0x92c   :  { %2986 = vpow2.f32 %v2094_v59  ;;  %v2084_v51 = vmul.f32 0.5, %v2052_v44  ;;  %v2055_v46 = vpop.f32.mrb[34].mxu0  ;;  %2136 = vrot.lane.b32.xlu0 %v2052_v44, %s3074_s1 }
 0x92d   :  { %v2057_v50 = vpop.f32.mrb[35].mxu0  ;;  %v2112_v53 = vadd.f32 %v2104_v35, %v3486_v56  ;;  %v2056_v15 = vadd.f32 %v2055_v46, %v3478_v39 }
 0x92e   :  { %v2979_v57 = vpop.eup %2978  ;;  %v2096_v60 = vmul.f32 1.442695, %v2084_v51  ;;  %v2058_v62 = vadd.f32 %v2057_v50, %v3465_v49 }
 0x92f   :  { %v2981_v63 = vpop.eup %2980  ;;  %v2105_v1 = vmul.f32 %v2979_v57, %v2073_v48 }
 0x930   :  { %2988 = vpow2.f32 %v2096_v60  ;;  %v2085_v55 = vmul.f32 0.5, %v2058_v62  ;;  %v2061_v2 = vpop.f32.mrb[36].mxu0  ;;  %2138 = vrot.lane.b32.xlu1 %v2058_v62, %s3074_s1  ;;  %2160 = vrot.lane.b32.xlu0 %v2112_v53, %s3075_s27  ;;  %v1910_v7 = vsub.f32 1.0, %v2981_v63  ;;  %v1912_v16 = vmul.f32 %v2981_v63, %v3438_v47  ;;  %v2076_v47 = vld [vmem:[%s3596_s2 + $0x20] sm:$0xff] }
 0x931   :  { %v2063_v3 = vpop.f32.mrb[37].mxu0  ;;  %v2113_v4 = vadd.f32 %v2105_v1, %v3495_v0  ;;  %v2062_v38 = vadd.f32 %v2061_v2, %v3478_v39 }
 0x932   :  { %v2983_v5 = vpop.eup %2982  ;;  %v2098_v45 = vmul.f32 1.442695, %v2085_v55  ;;  %v2064_v8 = vadd.f32 %v2063_v3, %v3465_v49 }
 0x933   :  { %v2985_v29 = vpop.eup %2984  ;;  %v2106_v10 = vmul.f32 %v2983_v5, %v2074_v42 }
 0x934   :  { %v1911_v11 = vmul.f32 %v2985_v29, %v1910_v7  ;;  %2990 = vpow2.f32 %v2098_v45  ;;  %v2086_v17 = vmul.f32 0.5, %v2064_v8  ;;  %2162 = vrot.lane.b32.xlu1 %v2113_v4, %s3075_s27  ;;  %2140 = vrot.lane.b32.xlu0 %v2064_v8, %s3074_s1 }
 0x935   :  { %v2114_v9 = vadd.f32 %v2106_v10, %v2038_v31 }
 0x936   :  { %v2987_v23 = vpop.eup %2986  ;;  %v1913_v22 = vadd.f32 %v1912_v16, %v1911_v11  ;;  %v2100_v58 = vmul.f32 1.442695, %v2086_v17 }
 0x937   :  { %v2107_v24 = vmul.f32 %v2987_v23, %v2075_v34  ;;  %v2079_v23 = vld [vmem:[%s3596_s2 + $0x38] sm:$0xff] }
 0x938   :  { %1915 = vst.msk [vmem:[#allocation7 + $0x38] sm:$0xff] %vm524_vm2, %v1913_v22  ;;  %2992 = vpow2.f32 %v2100_v58  ;;  %2164 = vrot.lane.b32.xlu0 %v2114_v9, %s3075_s27 }
 0x939   :  { %v2115_v61 = vadd.f32 %v2107_v24, %v2044_v28 }
 0x93a   :  { %v2989_v37 = vpop.eup %2988 }
 0x93b   :  { %2166 = vrot.lane.b32.xlu1 %v2115_v61, %s3075_s27  ;;  %v2108_v12 = vmul.f32 %v2989_v37, %v2076_v47 }
 0x93d   :  { %v2116_v13 = vadd.f32 %v2108_v12, %v2050_v27 }
 0x93e   :  { %v2991_v14 = vpop.eup %2990 }
 0x93f   :  { %2168 = vrot.lane.b32.xlu0 %v2116_v13, %s3075_s27  ;;  %v1923_v18 = vld [vmem:[#allocation7 + $0x38] sm:$0xff]  ;;  %v2109_v19 = vmul.f32 %v2991_v14, %v2077_v54 }
 0x940   :  { %2320 = vmatmul.mubr.msk.f32.gmra.mrb[38].mxu0 %vm524_vm2, %v1923_v18 }
 0x941   :  { %v2117_v21 = vadd.f32 %v2109_v19, %v2056_v15 }
 0x942   :  { %v2993_v25 = vpop.eup %2992 }
 0x943   :  { %2170 = vrot.lane.b32.xlu1 %v2117_v21, %s3075_s27  ;;  %v2110_v26 = vmul.f32 %v2993_v25, %v2078_v20 }
 0x945   :  { %v2118_v30 = vadd.f32 %v2110_v26, %v2062_v38 }
 0x947   :  { %2172 = vrot.lane.b32.xlu0 %v2118_v30, %s3075_s27 }
 0x98e   :  { %v2129_v32 = vpop.permute.xlu0 %2128 }
 0x98f   :  { %v2184_v41 = vsel %vm256_vm3, %v3486_v56, %v2129_v32 }
 0x992   :  { %v2131_v36 = vpop.permute.xlu0 %2130 }
 0x993   :  { %v2185_v35 = vsel %vm256_vm3, %v3495_v0, %v2131_v36 }
 0x996   :  { %v2133_v33 = vpop.permute.xlu1 %2132 }
 0x997   :  { %v2186_v53 = vsel %vm256_vm3, %v2038_v31, %v2133_v33 }
 0x99a   :  { %v2135_v6 = vpop.permute.xlu1 %2134 }
 0x99b   :  { %v2187_v62 = vsel %vm256_vm3, %v2044_v28, %v2135_v6 }
 0x99e   :  { %v2137_v40 = vpop.permute.xlu0 %2136 }
 0x99f   :  { %v2188_v55 = vsel %vm256_vm3, %v2050_v27, %v2137_v40 }
 0x9a2   :  { %v2139_v52 = vpop.permute.xlu1 %2138  ;;  %v2161_v43 = vpop.permute.xlu0 %2160 }
 0x9a3   :  { %v2192_v59 = vsel %vm524_vm2, %v2184_v41, %v2161_v43  ;;  %v2189_v4 = vsel %vm256_vm3, %v2056_v15, %v2139_v52 }
 0x9a4   :  { %v2201_v44 = vsel %vm2200_vm4, %v2192_v59, 0.0 }
 0x9a5   :  { %2209 = vst [vmem:[#allocation6] sm:$0xff] %v2201_v44 }
 0x9a6   :  { %v2163_v51 = vpop.permute.xlu1 %2162  ;;  %v2141_v46 = vpop.permute.xlu0 %2140 }
 0x9a7   :  { %v2193_v48 = vsel %vm524_vm2, %v2185_v35, %v2163_v51  ;;  %v2190_v8 = vsel %vm256_vm3, %v2062_v38, %v2141_v46 }
 0x9a8   :  { %v2202_v50 = vsel %vm2200_vm4, %v2193_v48, 0.0 }
 0x9a9   :  { %2210 = vst [vmem:[#allocation6 + $0x8] sm:$0xff] %v2202_v50 }
 0x9aa   :  { %v2165_v56 = vpop.permute.xlu0 %2164 }
 0x9ab   :  { %v2194_v57 = vsel %vm524_vm2, %v2186_v53, %v2165_v56 }
 0x9ac   :  { %v2203_v60 = vsel %vm2200_vm4, %v2194_v57, 0.0 }
 0x9ad   :  { %2211 = vst [vmem:[#allocation6 + $0x10] sm:$0xff] %v2203_v60  ;;  %v2167_v63 = vpop.permute.xlu1 %2166 }
 0x9ae   :  { %v2195_v0 = vsel %vm524_vm2, %v2187_v62, %v2167_v63 }
 0x9af   :  { %v2204_v1 = vsel %vm2200_vm4, %v2195_v0, 0.0 }
 0x9b0   :  { %2212 = vst [vmem:[#allocation6 + $0x18] sm:$0xff] %v2204_v1 }
 0x9b1   :  { %v2169_v2 = vpop.permute.xlu0 %2168 }
 0x9b2   :  { %v2196_v42 = vsel %vm524_vm2, %v2188_v55, %v2169_v2 }
 0x9b3   :  { %v2205_v3 = vsel %vm2200_vm4, %v2196_v42, 0.0 }
 0x9b4   :  { %2213 = vst [vmem:[#allocation6 + $0x20] sm:$0xff] %v2205_v3 }
 0x9b5   :  { %v2171_v5 = vpop.permute.xlu1 %2170 }
 0x9b6   :  { %v2197_v7 = vsel %vm524_vm2, %v2189_v4, %v2171_v5 }
 0x9b7   :  { %v2206_v45 = vsel %vm2200_vm4, %v2197_v7, 0.0 }
 0x9b8   :  { %2214 = vst [vmem:[#allocation6 + $0x28] sm:$0xff] %v2206_v45 }
 0x9b9   :  { %v2173_v29 = vpop.permute.xlu0 %2172 }
 0x9ba   :  { %v2198_v31 = vsel %vm524_vm2, %v2190_v8, %v2173_v29 }
 0x9bb   :  { %v2207_v10 = vsel %vm2200_vm4, %v2198_v31, 0.0 }
 0x9bc   :  { %2215 = vst [vmem:[#allocation6 + $0x30] sm:$0xff] %v2207_v10 }
 0xa13   :  { %v2067_v11 = vpop.f32.mrb[38].mxu0 }
 0xa14   :  { %v2069_v16 = vpop.f32.mrb[39].mxu0 }
 0xa15   :  { %v2070_v17 = vadd.f32 %v2069_v16, %v3465_v49 }
 0xa17   :  { %v2087_v34 = vmul.f32 0.5, %v2070_v17  ;;  %2142 = vrot.lane.b32.xlu1 %v2070_v17, %s3074_s1 }
 0xa19   :  { %v2102_v9 = vmul.f32 1.442695, %v2087_v34 }
 0xa1b   :  { %2994 = vpow2.f32 %v2102_v9 }
 0xa1c   :  { %3029 = shalt.err (!%p3026_p12)
}
 0xa1d   :  { %s3030_s19 = scalar_lea.hbm %s3599_s5, 1024 }
 0xa1e   :  { %p3031_p13 = scmp.ne.s32.totalorder %s3599_s5, %s3030_s19  ;;  %p3034_p0 = scmp.lt.u32.totalorder %s3030_s19, %s3599_s5 }
 0xa20   :  { %p3036_p1 = pnand %p3034_p0, %p3031_p13 }
 0xa22   :  { %3039 = shalt.err (!%p3036_p1)
}
 0xa23   :  { %s3077_s2 = smov 128   ;;  %s3078_s1 = smov 8   ;;  %v2068_v22 = vadd.f32 %v2067_v11, %v3478_v39 }
 0xa24   :  { %2240 = dma.vmem_to_hbm [thread:$0]  %s2235_s13, 1024, %s3599_s5, [#allocation8], %s3077_s2, %s3077_s2, %s3078_s1  }
 0xa25   :  { %v2995_v49 = vpop.eup %2994  ;;  %s3079_s25 = smov [#allocation6]  }
 0xa26   :  { %v2111_v58 = vmul.f32 %v2995_v49, %v2079_v23  ;;  %s2222_s26 = sshll.u32 %s3079_s25, 4  ;;  %s2223_s26 = int_to_ptr.vmem [resolvable:$true] %s2222_s26 }
 0xa27   :  { %s3040_s5 = scalar_lea.vmem %s2223_s26, 1024  ;;  %p3045_p3 = scmp.lt.s32.totalorder %s2223_s26, %s2223_s26 }
 0xa28   :  { %v2119_v28 = vadd.f32 %v2111_v58, %v2068_v22  ;;  %p3041_p2 = scmp.ne.s32.totalorder %s2223_s26, %s3040_s5  ;;  %p3046_p4 = scmp.lt.s32.totalorder %s3040_s5, %s3040_s5 }
 0xa2a   :  { %2174 = vrot.lane.b32.xlu1 %v2119_v28, %s3075_s27  ;;  %p3047_p5 = por %p3046_p4, %p3045_p3 }
 0xa2c   :  { %p3048_p6 = pnand %p3047_p5, %p3041_p2 }
 0xa89   :  { %v2143_v24 = vpop.permute.xlu1 %2142 }
 0xa8a   :  { %v2191_v47 = vsel %vm256_vm3, %v2068_v22, %v2143_v24 }
 0xa9c   :  { %v2175_v61 = vpop.permute.xlu1 %2174 }
 0xa9d   :  { %v2199_v37 = vsel %vm524_vm2, %v2191_v47, %v2175_v61 }
 0xa9e   :  { %v2208_v27 = vsel %vm2200_vm4, %v2199_v37, 0.0 }
 0xa9f   :  { %2216 = vst [vmem:[#allocation6 + $0x38] sm:$0xff] %v2208_v27 }
 0xaa0   :  { %3051 = shalt.err (!%p3048_p6)
}
 0xaa1   :  { %s3052_s29 = scalar_lea.hbm %s3598_s4, 1024 }
 0xaa2   :  { %p3053_p7 = scmp.ne.s32.totalorder %s3598_s4, %s3052_s29  ;;  %p3056_p8 = scmp.lt.u32.totalorder %s3052_s29, %s3598_s4 }
 0xaa4   :  { %p3058_p9 = pnand %p3056_p8, %p3053_p7 }
 0xaa6   :  { %3061 = shalt.err (!%p3058_p9)
}
 0xaa7   :  { %2228 = dma.vmem_to_hbm [thread:$0]  %s2223_s26, 1024, %s3598_s4, [#allocation5], %s3077_s2, %s3077_s2, %s3078_s1  }
 0xaa8   :  { %3064 = dma.done.wait [#allocation5], 1024  }
 0xaa9   :  { %3065 = vsyncadd [#allocation5], 4294966272 }
 0xaaa   :  { %3066 = dma.done.wait [#allocation8], 1024  }
 0xaab   :  { %3067 = vsyncadd [#allocation8], 4294966272 }
 0xaac   :  { %2247 = vsyncpa [#allocation4], 1 }
 0xaad   :  { %2248 = vsyncpa [#allocation5], 1 }
 0xaae   :  { %2249 = vsyncpa [#allocation8], 1 }

</bundles_post_ra>
